<compile_context>
chip_gen: v7x
topology: tpu7x:2x2x1
jax: 0.10.0
libtpu: 0.0.40
codegen_flags: <defaults>
</compile_context>

<pallas_src>
import math
from functools import partial

import jax
import jax.numpy as jnp
from jax import lax
from jax.experimental import pallas as pl
from jax.experimental.pallas import tpu as pltpu

PAD_INDEX = 0
NEG_INF = -1e9
OUT_LANES = 128          # lane-dense output slab width


def sakt_fused_kernel(lens_ref,                 # SMEM (B,) int32  (scalar prefetch)
                      q_ref, x_ref,             # (Bt, S, D) f32
                      wqkv_ref,                 # (L*3*H, D, d_k) bf16 (wq pre-scaled)
                      wo_ref,                   # (L*H, d_k, D)   bf16
                      w1_ref, w2_ref,           # (L, D, D)       bf16
                      vecs_ref,                 # (L, 6, D) f32: b1,b2,g0,be0,g1,be1
                      pw_ref, pb_ref,           # (1, D) f32, (1, 1) f32
                      o_ref,                    # (Bt, 1, OUT_LANES) f32
                      *, num_layers, num_head, d_k, block_b, S, D):
    Bt = block_b
    M = Bt * S
    H = num_head
    f32 = jnp.float32
    bf16 = jnp.bfloat16

    # ---- additive attention bias rebuilt in-kernel from per-sequence lengths ----
    b0 = pl.program_id(0) * Bt
    row = lax.broadcasted_iota(jnp.int32, (S, S), 0)
    col = lax.broadcasted_iota(jnp.int32, (S, S), 1)
    causal = col <= row
    biases = []
    for i in range(Bt):                         # static unroll over batch-in-block
        n = lens_ref[b0 + i]                    # non-pad tokens (leading padding)
        valid = jnp.logical_and(causal, col >= (S - n))
        biases.append(jnp.where(valid, 0.0, NEG_INF).astype(f32))
    bias = jnp.stack(biases, axis=0)            # (Bt, S, S), reused by all layers/heads

    q2 = q_ref[...].astype(f32).reshape(M, D)   # question embeddings (same every layer)
    x2 = x_ref[...].astype(f32).reshape(M, D)   # interaction + position embeddings
    q2b = q2.astype(bf16)

    def layernorm(v, g, b):                     # eps matches nn.LayerNorm(eps=1e-06)
        mu = jnp.mean(v, axis=-1, keepdims=True)
        vc = v - mu
        var = jnp.mean(vc * vc, axis=-1, keepdims=True)
        return vc * lax.rsqrt(var + 1e-6) * g + b

    for l in range(num_layers):                 # static unroll over layers
        vl = vecs_ref[l]                        # (6, D)
        b1, b2 = vl[0:1, :], vl[1:2, :]
        g0, be0 = vl[2:3, :], vl[3:4, :]
        g1, be1 = vl[4:5, :], vl[5:6, :]

        x2b = x2.astype(bf16)

        # ---- multi-head attention: per-head weights, accumulated output proj ----
        attn = jnp.zeros((M, D), f32)
        base = l * 3 * H
        for h in range(H):                      # static unroll over heads
            wq_h = wqkv_ref[base + 0 * H + h]   # (D, d_k), 1/sqrt(d_k) folded in
            wk_h = wqkv_ref[base + 1 * H + h]
            wv_h = wqkv_ref[base + 2 * H + h]
            qh = jnp.dot(q2b, wq_h, preferred_element_type=f32).reshape(Bt, S, d_k)
            kh = jnp.dot(x2b, wk_h, preferred_element_type=f32).reshape(Bt, S, d_k)
            vh = jnp.dot(x2b, wv_h, preferred_element_type=f32).reshape(Bt, S, d_k)

            s = jnp.einsum('bqd,bkd->bqk', qh.astype(bf16), kh.astype(bf16),
                           preferred_element_type=f32) + bias
            m = jnp.max(s, axis=-1, keepdims=True)
            e = jnp.exp(s - m)
            p = e * pl.reciprocal(jnp.sum(e, axis=-1, keepdims=True), approx=True)

            oh = jnp.einsum('bqk,bkd->bqd', p.astype(bf16), vh.astype(bf16),
                            preferred_element_type=f32)          # (Bt, S, d_k)
            wo_h = wo_ref[l * H + h]                              # (d_k, D)
            attn = attn + jnp.dot(oh.reshape(M, d_k).astype(bf16), wo_h,
                                  preferred_element_type=f32)

        # ---- residual (with key), LayerNorm, position-wise FFN, LayerNorm ----
        h1 = layernorm(x2 + attn, g0, be0)
        ff = jnp.dot(h1.astype(bf16), w1_ref[l], preferred_element_type=f32) + b1
        ff = jnp.maximum(ff, 0.0)
        ff = jnp.dot(ff.astype(bf16), w2_ref[l], preferred_element_type=f32) + b2
        x2 = layernorm(h1 + ff, g1, be1)

    # ---- fused prediction head: last position only, lane-dense output slab ----
    last = x2.reshape(Bt, S, D)[:, S - 1, :]                      # (Bt, D)
    logits = jnp.sum(last * pw_ref[...], axis=-1, keepdims=True) + pb_ref[...]
    o_ref[...] = jnp.broadcast_to(logits[:, :, None], (Bt, 1, OUT_LANES))


def init_params(key, hidden_dim, question_num, num_layers, num_head, seq_size):
    D = hidden_dim
    H = num_head
    d_k = D // H
    keys = jax.random.split(key, 4 + num_layers)

    def emb(k, n):
        t = jax.random.normal(k, (n, D), jnp.float32) * 0.1
        return t.at[PAD_INDEX].set(0.0)                           # padding_idx row is zero

    params = {
        "question_num": question_num,
        "hidden_dim": D,
        "num_layers": num_layers,
        "interaction_emb": emb(keys[0], 2 * question_num + 1),
        "question_emb": emb(keys[1], question_num + 1),
        "position_emb": emb(keys[2], seq_size + 1),
        "pred_w": jax.random.normal(keys[3], (1, D), jnp.float32) * 0.1,
        "pred_b": jnp.zeros((1, 1), jnp.float32),
    }

    s = 1.0 / math.sqrt(D)
    wqkv_blocks, wo_blocks, w1s, w2s, vecs = [], [], [], [], []
    for l in range(num_layers):
        ks = jax.random.split(keys[4 + l], 6)
        wq = jax.random.normal(ks[0], (D, D), jnp.float32) * s
        wk = jax.random.normal(ks[1], (D, D), jnp.float32) * s
        wv = jax.random.normal(ks[2], (D, D), jnp.float32) * s
        wo = jax.random.normal(ks[3], (D, D), jnp.float32) * s
        w1 = jax.random.normal(ks[4], (D, D), jnp.float32) * s
        w2 = jax.random.normal(ks[5], (D, D), jnp.float32) * s
        wq = wq / math.sqrt(d_k)          # fold attention scale into wq
        # per-head trace-time slices: (D, d_k) for q/k/v, (d_k, D) for output proj
        for w in (wq, wk, wv):
            for h in range(H):
                wqkv_blocks.append(w[:, h * d_k:(h + 1) * d_k])
        for h in range(H):
            wo_blocks.append(wo[h * d_k:(h + 1) * d_k, :])
        w1s.append(w1)
        w2s.append(w2)
        vecs.append(jnp.stack([
            jnp.zeros((D,), jnp.float32),   # ffn b1
            jnp.zeros((D,), jnp.float32),   # ffn b2
            jnp.ones((D,), jnp.float32),    # ln0 gamma
            jnp.zeros((D,), jnp.float32),   # ln0 beta
            jnp.ones((D,), jnp.float32),    # ln1 gamma
            jnp.zeros((D,), jnp.float32),   # ln1 beta
        ], axis=0))

    params["wqkv"] = jnp.stack(wqkv_blocks, 0).astype(jnp.bfloat16)   # (L*3*H, D, d_k)
    params["wo"] = jnp.stack(wo_blocks, 0).astype(jnp.bfloat16)       # (L*H, d_k, D)
    params["w1"] = jnp.stack(w1s, 0).astype(jnp.bfloat16)             # (L, D, D)
    params["w2"] = jnp.stack(w2s, 0).astype(jnp.bfloat16)             # (L, D, D)
    params["vecs"] = jnp.stack(vecs, 0)                               # (L, 6, D) f32
    return params


def sakt_forward(interaction_id, target_id, params, num_head, block_b=None):
    """interaction_id: (B, S) int32, target_id: (B, 1) int32 -> (B, 1) float32."""
    Q = params["question_num"]
    B, S = interaction_id.shape
    D = params["hidden_dim"]
    L = params["num_layers"]
    d_k = D // num_head

    if block_b is None:
        # >=2 parallel grid steps whenever B >= 2 (dual-TC v7x); for larger B this
        # also packs multiple sequences per step (bigger matmul M on v5e/v6e).
        block_b = max(1, B // 2)
    assert B % block_b == 0
    nb = B // block_b

    # ---- plain-JAX glue: id transform, embedding gathers, lengths ----
    question_id = interaction_id - Q * (interaction_id > Q).astype(jnp.int32)
    question_id = jnp.concatenate([question_id[:, 1:], target_id], axis=-1)

    interaction_vec = jnp.take(params["interaction_emb"], interaction_id, axis=0)
    question_vec = jnp.take(params["question_emb"], question_id, axis=0)

    non_pad = jnp.sum((question_id != PAD_INDEX).astype(jnp.int32), axis=-1)   # (B,)
    idx = jnp.arange(S, dtype=jnp.int32)[None, :]
    pos_index = jnp.maximum(idx - (S - non_pad[:, None]) + 1, 0)               # (B, S)
    position_vec = jnp.take(params["position_emb"], pos_index, axis=0)

    x = (interaction_vec + position_vec).astype(jnp.float32)   # key/value input
    q = question_vec.astype(jnp.float32)                       # query input

    kernel = partial(sakt_fused_kernel, num_layers=L, num_head=num_head,
                     d_k=d_k, block_b=block_b, S=S, D=D)

    seq_spec = pl.BlockSpec((block_b, S, D), lambda b, lens: (b, 0, 0))

    def full_spec(shape):
        return pl.BlockSpec(shape, lambda b, lens: (0,) * len(shape))

    grid_spec = pltpu.PrefetchScalarGridSpec(
        num_scalar_prefetch=1,
        grid=(nb,),
        in_specs=[
            seq_spec, seq_spec,
            full_spec(params["wqkv"].shape),
            full_spec(params["wo"].shape),
            full_spec(params["w1"].shape),
            full_spec(params["w2"].shape),
            full_spec(params["vecs"].shape),
            full_spec(params["pred_w"].shape),
            full_spec(params["pred_b"].shape),
        ],
        out_specs=pl.BlockSpec((block_b, 1, OUT_LANES), lambda b, lens: (b, 0, 0)),
    )

    out = pl.pallas_call(
        kernel,
        grid_spec=grid_spec,
        out_shape=jax.ShapeDtypeStruct((B, 1, OUT_LANES), jnp.float32),
        compiler_params=pltpu.CompilerParams(dimension_semantics=("parallel",)),
    )(non_pad.astype(jnp.int32), q, x,
      params["wqkv"], params["wo"], params["w1"], params["w2"],
      params["vecs"], params["pred_w"], params["pred_b"])

    return out[:, 0, 0:1]                                       # (B, 1)


if __name__ == "__main__":
    hidden_dim, question_num, num_layers, num_head, seq_size = 32, 10, 2, 4, 8
    B = 2

    key = jax.random.PRNGKey(0)
    k_inter, k_tgt, k_params = jax.random.split(key, 3)

    interaction_id = jax.random.randint(
        k_inter, (B, seq_size), 1, 2 * question_num + 1, dtype=jnp.int32)
    # give the second sequence some leading padding
    interaction_id = interaction_id.at[1, :3].set(PAD_INDEX)
    target_id = jax.random.randint(
        k_tgt, (B, 1), 1, question_num + 1, dtype=jnp.int32)

    params = init_params(k_params, hidden_dim, question_num, num_layers,
                         num_head, seq_size)

    out = sakt_forward(interaction_id, target_id, params, num_head)
    out = jax.block_until_ready(out)
    assert out.shape == (B, 1) and out.dtype == jnp.float32
    print("KERNEL_OK")
</pallas_src>

<mosaic_0001>
module attributes {stable_mosaic.version = 11 : i64} {
  func.func @sakt_fused_kernel(%arg0: i32, %arg1: memref<2xi32, #tpu.memory_space<smem>>, %arg2: memref<1x8x32xf32, #tpu.memory_space<vmem>>, %arg3: memref<1x8x32xf32, #tpu.memory_space<vmem>>, %arg4: memref<24x32x8xbf16, #tpu.memory_space<vmem>>, %arg5: memref<8x8x32xbf16, #tpu.memory_space<vmem>>, %arg6: memref<2x32x32xbf16, #tpu.memory_space<vmem>>, %arg7: memref<2x32x32xbf16, #tpu.memory_space<vmem>>, %arg8: memref<2x6x32xf32, #tpu.memory_space<vmem>>, %arg9: memref<1x32xf32, #tpu.memory_space<vmem>>, %arg10: memref<1x1xf32, #tpu.memory_space<vmem>>, %arg11: memref<1x1x128xf32, #tpu.memory_space<vmem>>) attributes {dimension_semantics = [#tpu.dimension_semantics<parallel>], iteration_bounds = array<i64: 2>, scalar_prefetch = 1 : i64, scratch_operands = 0 : i64, tpu.core_type = #tpu.core_type<tc>, window_params = [{transform_indices = @transform_0, window_bounds = array<i64: 1, 8, 32>}, {transform_indices = @transform_1, window_bounds = array<i64: 1, 8, 32>}, {pipeline_mode = #tpu.pipeline_mode<synchronous>, transform_indices = @transform_2, window_bounds = array<i64: 24, 32, 8>}, {pipeline_mode = #tpu.pipeline_mode<synchronous>, transform_indices = @transform_3, window_bounds = array<i64: 8, 8, 32>}, {pipeline_mode = #tpu.pipeline_mode<synchronous>, transform_indices = @transform_4, window_bounds = array<i64: 2, 32, 32>}, {pipeline_mode = #tpu.pipeline_mode<synchronous>, transform_indices = @transform_5, window_bounds = array<i64: 2, 32, 32>}, {pipeline_mode = #tpu.pipeline_mode<synchronous>, transform_indices = @transform_6, window_bounds = array<i64: 2, 6, 32>}, {pipeline_mode = #tpu.pipeline_mode<synchronous>, transform_indices = @transform_7, window_bounds = array<i64: 1, 32>}, {pipeline_mode = #tpu.pipeline_mode<synchronous>, transform_indices = @transform_8, window_bounds = array<i64: 1, 1>}, {transform_indices = @transform_9, window_bounds = array<i64: 1, 1, 128>}]} {
    %c1_i32 = arith.constant 1 : i32
    %0 = arith.muli %arg0, %c1_i32 : i32
    %1 = tpu.iota {dimensions = array<i32: 0>} : vector<8x8xi32>
    %2 = tpu.iota {dimensions = array<i32: 1>} : vector<8x8xi32>
    %3 = arith.cmpi sle, %2, %1 : vector<8x8xi32>
    %c0_i32 = arith.constant 0 : i32
    %4 = arith.addi %0, %c0_i32 : i32
    %5 = arith.index_cast %4 : i32 to index
    %6 = memref.load %arg1[%5] : memref<2xi32, #tpu.memory_space<smem>>
    %c8_i32 = arith.constant 8 : i32
    %7 = arith.subi %c8_i32, %6 : i32
    %8 = vector.broadcast %7 : i32 to vector<8x8xi32>
    %9 = arith.cmpi sge, %2, %8 : vector<8x8xi32>
    %10 = arith.andi %3, %9 : vector<8x8xi1>
    %cst = arith.constant 0.000000e+00 : f32
    %cst_0 = arith.constant -1.000000e+09 : f32
    %11 = vector.broadcast %cst : f32 to vector<8x8xf32>
    %12 = vector.broadcast %cst_0 : f32 to vector<8x8xf32>
    %13 = arith.select %10, %11, %12 : vector<8x8xi1>, vector<8x8xf32>
    %14 = vector.shape_cast %13 : vector<8x8xf32> to vector<1x8x8xf32>
    %c0 = arith.constant 0 : index
    %c0_1 = arith.constant 0 : index
    %c0_2 = arith.constant 0 : index
    %15 = vector.load %arg2[%c0, %c0_1, %c0_2] : memref<1x8x32xf32, #tpu.memory_space<vmem>>, vector<1x8x32xf32>
    %16 = vector.shape_cast %15 : vector<1x8x32xf32> to vector<8x32xf32>
    %c0_3 = arith.constant 0 : index
    %c0_4 = arith.constant 0 : index
    %c0_5 = arith.constant 0 : index
    %17 = vector.load %arg3[%c0_3, %c0_4, %c0_5] : memref<1x8x32xf32, #tpu.memory_space<vmem>>, vector<1x8x32xf32>
    %18 = vector.shape_cast %17 : vector<1x8x32xf32> to vector<8x32xf32>
    %19 = arith.truncf %16 : vector<8x32xf32> to vector<8x32xbf16>
    %c0_6 = arith.constant 0 : index
    %c0_7 = arith.constant 0 : index
    %c0_8 = arith.constant 0 : index
    %20 = vector.load %arg8[%c0_6, %c0_7, %c0_8] : memref<2x6x32xf32, #tpu.memory_space<vmem>>, vector<1x6x32xf32>
    %21 = vector.shape_cast %20 : vector<1x6x32xf32> to vector<6x32xf32>
    %22 = vector.extract_strided_slice %21 {offsets = [0, 0], sizes = [1, 32], strides = [1, 1]} : vector<6x32xf32> to vector<1x32xf32>
    %23 = vector.extract_strided_slice %21 {offsets = [1, 0], sizes = [1, 32], strides = [1, 1]} : vector<6x32xf32> to vector<1x32xf32>
    %24 = vector.extract_strided_slice %21 {offsets = [2, 0], sizes = [1, 32], strides = [1, 1]} : vector<6x32xf32> to vector<1x32xf32>
    %25 = vector.extract_strided_slice %21 {offsets = [3, 0], sizes = [1, 32], strides = [1, 1]} : vector<6x32xf32> to vector<1x32xf32>
    %26 = vector.extract_strided_slice %21 {offsets = [4, 0], sizes = [1, 32], strides = [1, 1]} : vector<6x32xf32> to vector<1x32xf32>
    %27 = vector.extract_strided_slice %21 {offsets = [5, 0], sizes = [1, 32], strides = [1, 1]} : vector<6x32xf32> to vector<1x32xf32>
    %28 = arith.truncf %18 : vector<8x32xf32> to vector<8x32xbf16>
    %cst_9 = arith.constant 0.000000e+00 : f32
    %29 = vector.broadcast %cst_9 : f32 to vector<8x32xf32>
    %c0_10 = arith.constant 0 : index
    %c0_11 = arith.constant 0 : index
    %c0_12 = arith.constant 0 : index
    %30 = vector.load %arg4[%c0_10, %c0_11, %c0_12] : memref<24x32x8xbf16, #tpu.memory_space<vmem>>, vector<1x32x8xbf16>
    %31 = vector.shape_cast %30 : vector<1x32x8xbf16> to vector<32x8xbf16>
    %c4 = arith.constant 4 : index
    %c0_13 = arith.constant 0 : index
    %c0_14 = arith.constant 0 : index
    %32 = vector.load %arg4[%c4, %c0_13, %c0_14] : memref<24x32x8xbf16, #tpu.memory_space<vmem>>, vector<1x32x8xbf16>
    %33 = vector.shape_cast %32 : vector<1x32x8xbf16> to vector<32x8xbf16>
    %c8 = arith.constant 8 : index
    %c0_15 = arith.constant 0 : index
    %c0_16 = arith.constant 0 : index
    %34 = vector.load %arg4[%c8, %c0_15, %c0_16] : memref<24x32x8xbf16, #tpu.memory_space<vmem>>, vector<1x32x8xbf16>
    %35 = vector.shape_cast %34 : vector<1x32x8xbf16> to vector<32x8xbf16>
    %cst_17 = arith.constant dense<0.000000e+00> : vector<8x8xf32>
    %36 = tpu.matmul %19, %31, %cst_17 {dimension_numbers = #tpu.dot_dimension_numbers<[1], [0], [0], [1], [0, 0, 1, 1], [], []>} : vector<8x32xbf16>, vector<32x8xbf16>, vector<8x8xf32> -> vector<8x8xf32>
    %37 = vector.shape_cast %36 : vector<8x8xf32> to vector<1x8x8xf32>
    %cst_18 = arith.constant dense<0.000000e+00> : vector<8x8xf32>
    %38 = tpu.matmul %28, %33, %cst_18 {dimension_numbers = #tpu.dot_dimension_numbers<[1], [0], [0], [1], [0, 0, 1, 1], [], []>} : vector<8x32xbf16>, vector<32x8xbf16>, vector<8x8xf32> -> vector<8x8xf32>
    %39 = vector.shape_cast %38 : vector<8x8xf32> to vector<1x8x8xf32>
    %cst_19 = arith.constant dense<0.000000e+00> : vector<8x8xf32>
    %40 = tpu.matmul %28, %35, %cst_19 {dimension_numbers = #tpu.dot_dimension_numbers<[1], [0], [0], [1], [0, 0, 1, 1], [], []>} : vector<8x32xbf16>, vector<32x8xbf16>, vector<8x8xf32> -> vector<8x8xf32>
    %41 = vector.shape_cast %40 : vector<8x8xf32> to vector<1x8x8xf32>
    %42 = arith.truncf %37 : vector<1x8x8xf32> to vector<1x8x8xbf16>
    %43 = arith.truncf %39 : vector<1x8x8xf32> to vector<1x8x8xbf16>
    "tpu.trace_start"() <{level = 10 : i32, message = "bqd,bkd->bqk"}> : () -> ()
    %cst_20 = arith.constant dense<0.000000e+00> : vector<1x8x8xf32>
    %44 = tpu.matmul %42, %43, %cst_20 {dimension_numbers = #tpu.dot_dimension_numbers<[2], [2], [1], [1], [0, 0, 0, 1, 1, 1], [0], [0]>} : vector<1x8x8xbf16>, vector<1x8x8xbf16>, vector<1x8x8xf32> -> vector<1x8x8xf32>
    "tpu.trace_stop"() : () -> ()
    %45 = arith.addf %44, %14 : vector<1x8x8xf32>
    %cst_21 = arith.constant dense<0xFF800000> : vector<1x8xf32>
    %46 = vector.multi_reduction <maximumf>, %45, %cst_21 [2] : vector<1x8x8xf32> to vector<1x8xf32>
    %47 = vector.shape_cast %46 : vector<1x8xf32> to vector<1x8x1xf32>
    %48 = vector.broadcast %47 : vector<1x8x1xf32> to vector<1x8x8xf32>
    %49 = arith.subf %45, %48 : vector<1x8x8xf32>
    %50 = math.exp %49 : vector<1x8x8xf32>
    %cst_22 = arith.constant dense<0.000000e+00> : vector<1x8xf32>
    %51 = vector.multi_reduction <add>, %50, %cst_22 [2] : vector<1x8x8xf32> to vector<1x8xf32>
    %52 = vector.shape_cast %51 : vector<1x8xf32> to vector<1x8x1xf32>
    %53 = tpu.reciprocal %52 {approx = true} : vector<1x8x1xf32> -> vector<1x8x1xf32>
    %54 = vector.broadcast %53 : vector<1x8x1xf32> to vector<1x8x8xf32>
    %55 = arith.mulf %50, %54 : vector<1x8x8xf32>
    %56 = arith.truncf %55 : vector<1x8x8xf32> to vector<1x8x8xbf16>
    %57 = arith.truncf %41 : vector<1x8x8xf32> to vector<1x8x8xbf16>
    "tpu.trace_start"() <{level = 10 : i32, message = "bqk,bkd->bqd"}> : () -> ()
    %cst_23 = arith.constant dense<0.000000e+00> : vector<1x8x8xf32>
    %58 = tpu.matmul %56, %57, %cst_23 {dimension_numbers = #tpu.dot_dimension_numbers<[2], [1], [1], [2], [0, 0, 0, 1, 1, 2], [0], [0]>} : vector<1x8x8xbf16>, vector<1x8x8xbf16>, vector<1x8x8xf32> -> vector<1x8x8xf32>
    "tpu.trace_stop"() : () -> ()
    %c0_24 = arith.constant 0 : index
    %c0_25 = arith.constant 0 : index
    %c0_26 = arith.constant 0 : index
    %59 = vector.load %arg5[%c0_24, %c0_25, %c0_26] : memref<8x8x32xbf16, #tpu.memory_space<vmem>>, vector<1x8x32xbf16>
    %60 = vector.shape_cast %59 : vector<1x8x32xbf16> to vector<8x32xbf16>
    %61 = vector.shape_cast %58 : vector<1x8x8xf32> to vector<8x8xf32>
    %62 = arith.truncf %61 : vector<8x8xf32> to vector<8x8xbf16>
    %cst_27 = arith.constant dense<0.000000e+00> : vector<8x32xf32>
    %63 = tpu.matmul %62, %60, %cst_27 {dimension_numbers = #tpu.dot_dimension_numbers<[1], [0], [0], [1], [0, 0, 1, 1], [], []>} : vector<8x8xbf16>, vector<8x32xbf16>, vector<8x32xf32> -> vector<8x32xf32>
    %64 = arith.addf %29, %63 : vector<8x32xf32>
    %c1 = arith.constant 1 : index
    %c0_28 = arith.constant 0 : index
    %c0_29 = arith.constant 0 : index
    %65 = vector.load %arg4[%c1, %c0_28, %c0_29] : memref<24x32x8xbf16, #tpu.memory_space<vmem>>, vector<1x32x8xbf16>
    %66 = vector.shape_cast %65 : vector<1x32x8xbf16> to vector<32x8xbf16>
    %c5 = arith.constant 5 : index
    %c0_30 = arith.constant 0 : index
    %c0_31 = arith.constant 0 : index
    %67 = vector.load %arg4[%c5, %c0_30, %c0_31] : memref<24x32x8xbf16, #tpu.memory_space<vmem>>, vector<1x32x8xbf16>
    %68 = vector.shape_cast %67 : vector<1x32x8xbf16> to vector<32x8xbf16>
    %c9 = arith.constant 9 : index
    %c0_32 = arith.constant 0 : index
    %c0_33 = arith.constant 0 : index
    %69 = vector.load %arg4[%c9, %c0_32, %c0_33] : memref<24x32x8xbf16, #tpu.memory_space<vmem>>, vector<1x32x8xbf16>
    %70 = vector.shape_cast %69 : vector<1x32x8xbf16> to vector<32x8xbf16>
    %cst_34 = arith.constant dense<0.000000e+00> : vector<8x8xf32>
    %71 = tpu.matmul %19, %66, %cst_34 {dimension_numbers = #tpu.dot_dimension_numbers<[1], [0], [0], [1], [0, 0, 1, 1], [], []>} : vector<8x32xbf16>, vector<32x8xbf16>, vector<8x8xf32> -> vector<8x8xf32>
    %72 = vector.shape_cast %71 : vector<8x8xf32> to vector<1x8x8xf32>
    %cst_35 = arith.constant dense<0.000000e+00> : vector<8x8xf32>
    %73 = tpu.matmul %28, %68, %cst_35 {dimension_numbers = #tpu.dot_dimension_numbers<[1], [0], [0], [1], [0, 0, 1, 1], [], []>} : vector<8x32xbf16>, vector<32x8xbf16>, vector<8x8xf32> -> vector<8x8xf32>
    %74 = vector.shape_cast %73 : vector<8x8xf32> to vector<1x8x8xf32>
    %cst_36 = arith.constant dense<0.000000e+00> : vector<8x8xf32>
    %75 = tpu.matmul %28, %70, %cst_36 {dimension_numbers = #tpu.dot_dimension_numbers<[1], [0], [0], [1], [0, 0, 1, 1], [], []>} : vector<8x32xbf16>, vector<32x8xbf16>, vector<8x8xf32> -> vector<8x8xf32>
    %76 = vector.shape_cast %75 : vector<8x8xf32> to vector<1x8x8xf32>
    %77 = arith.truncf %72 : vector<1x8x8xf32> to vector<1x8x8xbf16>
    %78 = arith.truncf %74 : vector<1x8x8xf32> to vector<1x8x8xbf16>
    "tpu.trace_start"() <{level = 10 : i32, message = "bqd,bkd->bqk"}> : () -> ()
    %cst_37 = arith.constant dense<0.000000e+00> : vector<1x8x8xf32>
    %79 = tpu.matmul %77, %78, %cst_37 {dimension_numbers = #tpu.dot_dimension_numbers<[2], [2], [1], [1], [0, 0, 0, 1, 1, 1], [0], [0]>} : vector<1x8x8xbf16>, vector<1x8x8xbf16>, vector<1x8x8xf32> -> vector<1x8x8xf32>
    "tpu.trace_stop"() : () -> ()
    %80 = arith.addf %79, %14 : vector<1x8x8xf32>
    %cst_38 = arith.constant dense<0xFF800000> : vector<1x8xf32>
    %81 = vector.multi_reduction <maximumf>, %80, %cst_38 [2] : vector<1x8x8xf32> to vector<1x8xf32>
    %82 = vector.shape_cast %81 : vector<1x8xf32> to vector<1x8x1xf32>
    %83 = vector.broadcast %82 : vector<1x8x1xf32> to vector<1x8x8xf32>
    %84 = arith.subf %80, %83 : vector<1x8x8xf32>
    %85 = math.exp %84 : vector<1x8x8xf32>
    %cst_39 = arith.constant dense<0.000000e+00> : vector<1x8xf32>
    %86 = vector.multi_reduction <add>, %85, %cst_39 [2] : vector<1x8x8xf32> to vector<1x8xf32>
    %87 = vector.shape_cast %86 : vector<1x8xf32> to vector<1x8x1xf32>
    %88 = tpu.reciprocal %87 {approx = true} : vector<1x8x1xf32> -> vector<1x8x1xf32>
    %89 = vector.broadcast %88 : vector<1x8x1xf32> to vector<1x8x8xf32>
    %90 = arith.mulf %85, %89 : vector<1x8x8xf32>
    %91 = arith.truncf %90 : vector<1x8x8xf32> to vector<1x8x8xbf16>
    %92 = arith.truncf %76 : vector<1x8x8xf32> to vector<1x8x8xbf16>
    "tpu.trace_start"() <{level = 10 : i32, message = "bqk,bkd->bqd"}> : () -> ()
    %cst_40 = arith.constant dense<0.000000e+00> : vector<1x8x8xf32>
    %93 = tpu.matmul %91, %92, %cst_40 {dimension_numbers = #tpu.dot_dimension_numbers<[2], [1], [1], [2], [0, 0, 0, 1, 1, 2], [0], [0]>} : vector<1x8x8xbf16>, vector<1x8x8xbf16>, vector<1x8x8xf32> -> vector<1x8x8xf32>
    "tpu.trace_stop"() : () -> ()
    %c1_41 = arith.constant 1 : index
    %c0_42 = arith.constant 0 : index
    %c0_43 = arith.constant 0 : index
    %94 = vector.load %arg5[%c1_41, %c0_42, %c0_43] : memref<8x8x32xbf16, #tpu.memory_space<vmem>>, vector<1x8x32xbf16>
    %95 = vector.shape_cast %94 : vector<1x8x32xbf16> to vector<8x32xbf16>
    %96 = vector.shape_cast %93 : vector<1x8x8xf32> to vector<8x8xf32>
    %97 = arith.truncf %96 : vector<8x8xf32> to vector<8x8xbf16>
    %cst_44 = arith.constant dense<0.000000e+00> : vector<8x32xf32>
    %98 = tpu.matmul %97, %95, %cst_44 {dimension_numbers = #tpu.dot_dimension_numbers<[1], [0], [0], [1], [0, 0, 1, 1], [], []>} : vector<8x8xbf16>, vector<8x32xbf16>, vector<8x32xf32> -> vector<8x32xf32>
    %99 = arith.addf %64, %98 : vector<8x32xf32>
    %c2 = arith.constant 2 : index
    %c0_45 = arith.constant 0 : index
    %c0_46 = arith.constant 0 : index
    %100 = vector.load %arg4[%c2, %c0_45, %c0_46] : memref<24x32x8xbf16, #tpu.memory_space<vmem>>, vector<1x32x8xbf16>
    %101 = vector.shape_cast %100 : vector<1x32x8xbf16> to vector<32x8xbf16>
    %c6 = arith.constant 6 : index
    %c0_47 = arith.constant 0 : index
    %c0_48 = arith.constant 0 : index
    %102 = vector.load %arg4[%c6, %c0_47, %c0_48] : memref<24x32x8xbf16, #tpu.memory_space<vmem>>, vector<1x32x8xbf16>
    %103 = vector.shape_cast %102 : vector<1x32x8xbf16> to vector<32x8xbf16>
    %c10 = arith.constant 10 : index
    %c0_49 = arith.constant 0 : index
    %c0_50 = arith.constant 0 : index
    %104 = vector.load %arg4[%c10, %c0_49, %c0_50] : memref<24x32x8xbf16, #tpu.memory_space<vmem>>, vector<1x32x8xbf16>
    %105 = vector.shape_cast %104 : vector<1x32x8xbf16> to vector<32x8xbf16>
    %cst_51 = arith.constant dense<0.000000e+00> : vector<8x8xf32>
    %106 = tpu.matmul %19, %101, %cst_51 {dimension_numbers = #tpu.dot_dimension_numbers<[1], [0], [0], [1], [0, 0, 1, 1], [], []>} : vector<8x32xbf16>, vector<32x8xbf16>, vector<8x8xf32> -> vector<8x8xf32>
    %107 = vector.shape_cast %106 : vector<8x8xf32> to vector<1x8x8xf32>
    %cst_52 = arith.constant dense<0.000000e+00> : vector<8x8xf32>
    %108 = tpu.matmul %28, %103, %cst_52 {dimension_numbers = #tpu.dot_dimension_numbers<[1], [0], [0], [1], [0, 0, 1, 1], [], []>} : vector<8x32xbf16>, vector<32x8xbf16>, vector<8x8xf32> -> vector<8x8xf32>
    %109 = vector.shape_cast %108 : vector<8x8xf32> to vector<1x8x8xf32>
    %cst_53 = arith.constant dense<0.000000e+00> : vector<8x8xf32>
    %110 = tpu.matmul %28, %105, %cst_53 {dimension_numbers = #tpu.dot_dimension_numbers<[1], [0], [0], [1], [0, 0, 1, 1], [], []>} : vector<8x32xbf16>, vector<32x8xbf16>, vector<8x8xf32> -> vector<8x8xf32>
    %111 = vector.shape_cast %110 : vector<8x8xf32> to vector<1x8x8xf32>
    %112 = arith.truncf %107 : vector<1x8x8xf32> to vector<1x8x8xbf16>
    %113 = arith.truncf %109 : vector<1x8x8xf32> to vector<1x8x8xbf16>
    "tpu.trace_start"() <{level = 10 : i32, message = "bqd,bkd->bqk"}> : () -> ()
    %cst_54 = arith.constant dense<0.000000e+00> : vector<1x8x8xf32>
    %114 = tpu.matmul %112, %113, %cst_54 {dimension_numbers = #tpu.dot_dimension_numbers<[2], [2], [1], [1], [0, 0, 0, 1, 1, 1], [0], [0]>} : vector<1x8x8xbf16>, vector<1x8x8xbf16>, vector<1x8x8xf32> -> vector<1x8x8xf32>
    "tpu.trace_stop"() : () -> ()
    %115 = arith.addf %114, %14 : vector<1x8x8xf32>
    %cst_55 = arith.constant dense<0xFF800000> : vector<1x8xf32>
    %116 = vector.multi_reduction <maximumf>, %115, %cst_55 [2] : vector<1x8x8xf32> to vector<1x8xf32>
    %117 = vector.shape_cast %116 : vector<1x8xf32> to vector<1x8x1xf32>
    %118 = vector.broadcast %117 : vector<1x8x1xf32> to vector<1x8x8xf32>
    %119 = arith.subf %115, %118 : vector<1x8x8xf32>
    %120 = math.exp %119 : vector<1x8x8xf32>
    %cst_56 = arith.constant dense<0.000000e+00> : vector<1x8xf32>
    %121 = vector.multi_reduction <add>, %120, %cst_56 [2] : vector<1x8x8xf32> to vector<1x8xf32>
    %122 = vector.shape_cast %121 : vector<1x8xf32> to vector<1x8x1xf32>
    %123 = tpu.reciprocal %122 {approx = true} : vector<1x8x1xf32> -> vector<1x8x1xf32>
    %124 = vector.broadcast %123 : vector<1x8x1xf32> to vector<1x8x8xf32>
    %125 = arith.mulf %120, %124 : vector<1x8x8xf32>
    %126 = arith.truncf %125 : vector<1x8x8xf32> to vector<1x8x8xbf16>
    %127 = arith.truncf %111 : vector<1x8x8xf32> to vector<1x8x8xbf16>
    "tpu.trace_start"() <{level = 10 : i32, message = "bqk,bkd->bqd"}> : () -> ()
    %cst_57 = arith.constant dense<0.000000e+00> : vector<1x8x8xf32>
    %128 = tpu.matmul %126, %127, %cst_57 {dimension_numbers = #tpu.dot_dimension_numbers<[2], [1], [1], [2], [0, 0, 0, 1, 1, 2], [0], [0]>} : vector<1x8x8xbf16>, vector<1x8x8xbf16>, vector<1x8x8xf32> -> vector<1x8x8xf32>
    "tpu.trace_stop"() : () -> ()
    %c2_58 = arith.constant 2 : index
    %c0_59 = arith.constant 0 : index
    %c0_60 = arith.constant 0 : index
    %129 = vector.load %arg5[%c2_58, %c0_59, %c0_60] : memref<8x8x32xbf16, #tpu.memory_space<vmem>>, vector<1x8x32xbf16>
    %130 = vector.shape_cast %129 : vector<1x8x32xbf16> to vector<8x32xbf16>
    %131 = vector.shape_cast %128 : vector<1x8x8xf32> to vector<8x8xf32>
    %132 = arith.truncf %131 : vector<8x8xf32> to vector<8x8xbf16>
    %cst_61 = arith.constant dense<0.000000e+00> : vector<8x32xf32>
    %133 = tpu.matmul %132, %130, %cst_61 {dimension_numbers = #tpu.dot_dimension_numbers<[1], [0], [0], [1], [0, 0, 1, 1], [], []>} : vector<8x8xbf16>, vector<8x32xbf16>, vector<8x32xf32> -> vector<8x32xf32>
    %134 = arith.addf %99, %133 : vector<8x32xf32>
    %c3 = arith.constant 3 : index
    %c0_62 = arith.constant 0 : index
    %c0_63 = arith.constant 0 : index
    %135 = vector.load %arg4[%c3, %c0_62, %c0_63] : memref<24x32x8xbf16, #tpu.memory_space<vmem>>, vector<1x32x8xbf16>
    %136 = vector.shape_cast %135 : vector<1x32x8xbf16> to vector<32x8xbf16>
    %c7 = arith.constant 7 : index
    %c0_64 = arith.constant 0 : index
    %c0_65 = arith.constant 0 : index
    %137 = vector.load %arg4[%c7, %c0_64, %c0_65] : memref<24x32x8xbf16, #tpu.memory_space<vmem>>, vector<1x32x8xbf16>
    %138 = vector.shape_cast %137 : vector<1x32x8xbf16> to vector<32x8xbf16>
    %c11 = arith.constant 11 : index
    %c0_66 = arith.constant 0 : index
    %c0_67 = arith.constant 0 : index
    %139 = vector.load %arg4[%c11, %c0_66, %c0_67] : memref<24x32x8xbf16, #tpu.memory_space<vmem>>, vector<1x32x8xbf16>
    %140 = vector.shape_cast %139 : vector<1x32x8xbf16> to vector<32x8xbf16>
    %cst_68 = arith.constant dense<0.000000e+00> : vector<8x8xf32>
    %141 = tpu.matmul %19, %136, %cst_68 {dimension_numbers = #tpu.dot_dimension_numbers<[1], [0], [0], [1], [0, 0, 1, 1], [], []>} : vector<8x32xbf16>, vector<32x8xbf16>, vector<8x8xf32> -> vector<8x8xf32>
    %142 = vector.shape_cast %141 : vector<8x8xf32> to vector<1x8x8xf32>
    %cst_69 = arith.constant dense<0.000000e+00> : vector<8x8xf32>
    %143 = tpu.matmul %28, %138, %cst_69 {dimension_numbers = #tpu.dot_dimension_numbers<[1], [0], [0], [1], [0, 0, 1, 1], [], []>} : vector<8x32xbf16>, vector<32x8xbf16>, vector<8x8xf32> -> vector<8x8xf32>
    %144 = vector.shape_cast %143 : vector<8x8xf32> to vector<1x8x8xf32>
    %cst_70 = arith.constant dense<0.000000e+00> : vector<8x8xf32>
    %145 = tpu.matmul %28, %140, %cst_70 {dimension_numbers = #tpu.dot_dimension_numbers<[1], [0], [0], [1], [0, 0, 1, 1], [], []>} : vector<8x32xbf16>, vector<32x8xbf16>, vector<8x8xf32> -> vector<8x8xf32>
    %146 = vector.shape_cast %145 : vector<8x8xf32> to vector<1x8x8xf32>
    %147 = arith.truncf %142 : vector<1x8x8xf32> to vector<1x8x8xbf16>
    %148 = arith.truncf %144 : vector<1x8x8xf32> to vector<1x8x8xbf16>
    "tpu.trace_start"() <{level = 10 : i32, message = "bqd,bkd->bqk"}> : () -> ()
    %cst_71 = arith.constant dense<0.000000e+00> : vector<1x8x8xf32>
    %149 = tpu.matmul %147, %148, %cst_71 {dimension_numbers = #tpu.dot_dimension_numbers<[2], [2], [1], [1], [0, 0, 0, 1, 1, 1], [0], [0]>} : vector<1x8x8xbf16>, vector<1x8x8xbf16>, vector<1x8x8xf32> -> vector<1x8x8xf32>
    "tpu.trace_stop"() : () -> ()
    %150 = arith.addf %149, %14 : vector<1x8x8xf32>
    %cst_72 = arith.constant dense<0xFF800000> : vector<1x8xf32>
    %151 = vector.multi_reduction <maximumf>, %150, %cst_72 [2] : vector<1x8x8xf32> to vector<1x8xf32>
    %152 = vector.shape_cast %151 : vector<1x8xf32> to vector<1x8x1xf32>
    %153 = vector.broadcast %152 : vector<1x8x1xf32> to vector<1x8x8xf32>
    %154 = arith.subf %150, %153 : vector<1x8x8xf32>
    %155 = math.exp %154 : vector<1x8x8xf32>
    %cst_73 = arith.constant dense<0.000000e+00> : vector<1x8xf32>
    %156 = vector.multi_reduction <add>, %155, %cst_73 [2] : vector<1x8x8xf32> to vector<1x8xf32>
    %157 = vector.shape_cast %156 : vector<1x8xf32> to vector<1x8x1xf32>
    %158 = tpu.reciprocal %157 {approx = true} : vector<1x8x1xf32> -> vector<1x8x1xf32>
    %159 = vector.broadcast %158 : vector<1x8x1xf32> to vector<1x8x8xf32>
    %160 = arith.mulf %155, %159 : vector<1x8x8xf32>
    %161 = arith.truncf %160 : vector<1x8x8xf32> to vector<1x8x8xbf16>
    %162 = arith.truncf %146 : vector<1x8x8xf32> to vector<1x8x8xbf16>
    "tpu.trace_start"() <{level = 10 : i32, message = "bqk,bkd->bqd"}> : () -> ()
    %cst_74 = arith.constant dense<0.000000e+00> : vector<1x8x8xf32>
    %163 = tpu.matmul %161, %162, %cst_74 {dimension_numbers = #tpu.dot_dimension_numbers<[2], [1], [1], [2], [0, 0, 0, 1, 1, 2], [0], [0]>} : vector<1x8x8xbf16>, vector<1x8x8xbf16>, vector<1x8x8xf32> -> vector<1x8x8xf32>
    "tpu.trace_stop"() : () -> ()
    %c3_75 = arith.constant 3 : index
    %c0_76 = arith.constant 0 : index
    %c0_77 = arith.constant 0 : index
    %164 = vector.load %arg5[%c3_75, %c0_76, %c0_77] : memref<8x8x32xbf16, #tpu.memory_space<vmem>>, vector<1x8x32xbf16>
    %165 = vector.shape_cast %164 : vector<1x8x32xbf16> to vector<8x32xbf16>
    %166 = vector.shape_cast %163 : vector<1x8x8xf32> to vector<8x8xf32>
    %167 = arith.truncf %166 : vector<8x8xf32> to vector<8x8xbf16>
    %cst_78 = arith.constant dense<0.000000e+00> : vector<8x32xf32>
    %168 = tpu.matmul %167, %165, %cst_78 {dimension_numbers = #tpu.dot_dimension_numbers<[1], [0], [0], [1], [0, 0, 1, 1], [], []>} : vector<8x8xbf16>, vector<8x32xbf16>, vector<8x32xf32> -> vector<8x32xf32>
    %169 = arith.addf %134, %168 : vector<8x32xf32>
    %170 = arith.addf %18, %169 : vector<8x32xf32>
    %cst_79 = arith.constant dense<0.000000e+00> : vector<8xf32>
    %171 = vector.multi_reduction <add>, %170, %cst_79 [1] : vector<8x32xf32> to vector<8xf32>
    %172 = vector.shape_cast %171 : vector<8xf32> to vector<8x1xf32>
    %cst_80 = arith.constant 3.200000e+01 : f32
    %173 = vector.broadcast %cst_80 : f32 to vector<8x1xf32>
    %174 = arith.divf %172, %173 : vector<8x1xf32>
    %175 = vector.broadcast %174 : vector<8x1xf32> to vector<8x32xf32>
    %176 = arith.subf %170, %175 : vector<8x32xf32>
    %177 = arith.mulf %176, %176 : vector<8x32xf32>
    %cst_81 = arith.constant dense<0.000000e+00> : vector<8xf32>
    %178 = vector.multi_reduction <add>, %177, %cst_81 [1] : vector<8x32xf32> to vector<8xf32>
    %179 = vector.shape_cast %178 : vector<8xf32> to vector<8x1xf32>
    %cst_82 = arith.constant 3.200000e+01 : f32
    %180 = vector.broadcast %cst_82 : f32 to vector<8x1xf32>
    %181 = arith.divf %179, %180 : vector<8x1xf32>
    %cst_83 = arith.constant 9.99999997E-7 : f32
    %182 = vector.broadcast %cst_83 : f32 to vector<8x1xf32>
    %183 = arith.addf %181, %182 : vector<8x1xf32>
    %184 = math.rsqrt %183 : vector<8x1xf32>
    %185 = vector.broadcast %184 : vector<8x1xf32> to vector<8x32xf32>
    %186 = arith.mulf %176, %185 : vector<8x32xf32>
    %187 = vector.broadcast %24 : vector<1x32xf32> to vector<8x32xf32>
    %188 = arith.mulf %186, %187 : vector<8x32xf32>
    %189 = vector.broadcast %25 : vector<1x32xf32> to vector<8x32xf32>
    %190 = arith.addf %188, %189 : vector<8x32xf32>
    %191 = arith.truncf %190 : vector<8x32xf32> to vector<8x32xbf16>
    %c0_84 = arith.constant 0 : index
    %c0_85 = arith.constant 0 : index
    %c0_86 = arith.constant 0 : index
    %192 = vector.load %arg6[%c0_84, %c0_85, %c0_86] : memref<2x32x32xbf16, #tpu.memory_space<vmem>>, vector<1x32x32xbf16>
    %193 = vector.shape_cast %192 : vector<1x32x32xbf16> to vector<32x32xbf16>
    %cst_87 = arith.constant dense<0.000000e+00> : vector<8x32xf32>
    %194 = tpu.matmul %191, %193, %cst_87 {dimension_numbers = #tpu.dot_dimension_numbers<[1], [0], [0], [1], [0, 0, 1, 1], [], []>} : vector<8x32xbf16>, vector<32x32xbf16>, vector<8x32xf32> -> vector<8x32xf32>
    %195 = vector.broadcast %22 : vector<1x32xf32> to vector<8x32xf32>
    %196 = arith.addf %194, %195 : vector<8x32xf32>
    %cst_88 = arith.constant 0.000000e+00 : f32
    %197 = vector.broadcast %cst_88 : f32 to vector<8x32xf32>
    %198 = arith.maximumf %196, %197 : vector<8x32xf32>
    %199 = arith.truncf %198 : vector<8x32xf32> to vector<8x32xbf16>
    %c0_89 = arith.constant 0 : index
    %c0_90 = arith.constant 0 : index
    %c0_91 = arith.constant 0 : index
    %200 = vector.load %arg7[%c0_89, %c0_90, %c0_91] : memref<2x32x32xbf16, #tpu.memory_space<vmem>>, vector<1x32x32xbf16>
    %201 = vector.shape_cast %200 : vector<1x32x32xbf16> to vector<32x32xbf16>
    %cst_92 = arith.constant dense<0.000000e+00> : vector<8x32xf32>
    %202 = tpu.matmul %199, %201, %cst_92 {dimension_numbers = #tpu.dot_dimension_numbers<[1], [0], [0], [1], [0, 0, 1, 1], [], []>} : vector<8x32xbf16>, vector<32x32xbf16>, vector<8x32xf32> -> vector<8x32xf32>
    %203 = vector.broadcast %23 : vector<1x32xf32> to vector<8x32xf32>
    %204 = arith.addf %202, %203 : vector<8x32xf32>
    %205 = arith.addf %190, %204 : vector<8x32xf32>
    %cst_93 = arith.constant dense<0.000000e+00> : vector<8xf32>
    %206 = vector.multi_reduction <add>, %205, %cst_93 [1] : vector<8x32xf32> to vector<8xf32>
    %207 = vector.shape_cast %206 : vector<8xf32> to vector<8x1xf32>
    %cst_94 = arith.constant 3.200000e+01 : f32
    %208 = vector.broadcast %cst_94 : f32 to vector<8x1xf32>
    %209 = arith.divf %207, %208 : vector<8x1xf32>
    %210 = vector.broadcast %209 : vector<8x1xf32> to vector<8x32xf32>
    %211 = arith.subf %205, %210 : vector<8x32xf32>
    %212 = arith.mulf %211, %211 : vector<8x32xf32>
    %cst_95 = arith.constant dense<0.000000e+00> : vector<8xf32>
    %213 = vector.multi_reduction <add>, %212, %cst_95 [1] : vector<8x32xf32> to vector<8xf32>
    %214 = vector.shape_cast %213 : vector<8xf32> to vector<8x1xf32>
    %cst_96 = arith.constant 3.200000e+01 : f32
    %215 = vector.broadcast %cst_96 : f32 to vector<8x1xf32>
    %216 = arith.divf %214, %215 : vector<8x1xf32>
    %cst_97 = arith.constant 9.99999997E-7 : f32
    %217 = vector.broadcast %cst_97 : f32 to vector<8x1xf32>
    %218 = arith.addf %216, %217 : vector<8x1xf32>
    %219 = math.rsqrt %218 : vector<8x1xf32>
    %220 = vector.broadcast %219 : vector<8x1xf32> to vector<8x32xf32>
    %221 = arith.mulf %211, %220 : vector<8x32xf32>
    %222 = vector.broadcast %26 : vector<1x32xf32> to vector<8x32xf32>
    %223 = arith.mulf %221, %222 : vector<8x32xf32>
    %224 = vector.broadcast %27 : vector<1x32xf32> to vector<8x32xf32>
    %225 = arith.addf %223, %224 : vector<8x32xf32>
    %c1_98 = arith.constant 1 : index
    %c0_99 = arith.constant 0 : index
    %c0_100 = arith.constant 0 : index
    %226 = vector.load %arg8[%c1_98, %c0_99, %c0_100] : memref<2x6x32xf32, #tpu.memory_space<vmem>>, vector<1x6x32xf32>
    %227 = vector.shape_cast %226 : vector<1x6x32xf32> to vector<6x32xf32>
    %228 = vector.extract_strided_slice %227 {offsets = [0, 0], sizes = [1, 32], strides = [1, 1]} : vector<6x32xf32> to vector<1x32xf32>
    %229 = vector.extract_strided_slice %227 {offsets = [1, 0], sizes = [1, 32], strides = [1, 1]} : vector<6x32xf32> to vector<1x32xf32>
    %230 = vector.extract_strided_slice %227 {offsets = [2, 0], sizes = [1, 32], strides = [1, 1]} : vector<6x32xf32> to vector<1x32xf32>
    %231 = vector.extract_strided_slice %227 {offsets = [3, 0], sizes = [1, 32], strides = [1, 1]} : vector<6x32xf32> to vector<1x32xf32>
    %232 = vector.extract_strided_slice %227 {offsets = [4, 0], sizes = [1, 32], strides = [1, 1]} : vector<6x32xf32> to vector<1x32xf32>
    %233 = vector.extract_strided_slice %227 {offsets = [5, 0], sizes = [1, 32], strides = [1, 1]} : vector<6x32xf32> to vector<1x32xf32>
    %234 = arith.truncf %225 : vector<8x32xf32> to vector<8x32xbf16>
    %cst_101 = arith.constant 0.000000e+00 : f32
    %235 = vector.broadcast %cst_101 : f32 to vector<8x32xf32>
    %c12 = arith.constant 12 : index
    %c0_102 = arith.constant 0 : index
    %c0_103 = arith.constant 0 : index
    %236 = vector.load %arg4[%c12, %c0_102, %c0_103] : memref<24x32x8xbf16, #tpu.memory_space<vmem>>, vector<1x32x8xbf16>
    %237 = vector.shape_cast %236 : vector<1x32x8xbf16> to vector<32x8xbf16>
    %c16 = arith.constant 16 : index
    %c0_104 = arith.constant 0 : index
    %c0_105 = arith.constant 0 : index
    %238 = vector.load %arg4[%c16, %c0_104, %c0_105] : memref<24x32x8xbf16, #tpu.memory_space<vmem>>, vector<1x32x8xbf16>
    %239 = vector.shape_cast %238 : vector<1x32x8xbf16> to vector<32x8xbf16>
    %c20 = arith.constant 20 : index
    %c0_106 = arith.constant 0 : index
    %c0_107 = arith.constant 0 : index
    %240 = vector.load %arg4[%c20, %c0_106, %c0_107] : memref<24x32x8xbf16, #tpu.memory_space<vmem>>, vector<1x32x8xbf16>
    %241 = vector.shape_cast %240 : vector<1x32x8xbf16> to vector<32x8xbf16>
    %cst_108 = arith.constant dense<0.000000e+00> : vector<8x8xf32>
    %242 = tpu.matmul %19, %237, %cst_108 {dimension_numbers = #tpu.dot_dimension_numbers<[1], [0], [0], [1], [0, 0, 1, 1], [], []>} : vector<8x32xbf16>, vector<32x8xbf16>, vector<8x8xf32> -> vector<8x8xf32>
    %243 = vector.shape_cast %242 : vector<8x8xf32> to vector<1x8x8xf32>
    %cst_109 = arith.constant dense<0.000000e+00> : vector<8x8xf32>
    %244 = tpu.matmul %234, %239, %cst_109 {dimension_numbers = #tpu.dot_dimension_numbers<[1], [0], [0], [1], [0, 0, 1, 1], [], []>} : vector<8x32xbf16>, vector<32x8xbf16>, vector<8x8xf32> -> vector<8x8xf32>
    %245 = vector.shape_cast %244 : vector<8x8xf32> to vector<1x8x8xf32>
    %cst_110 = arith.constant dense<0.000000e+00> : vector<8x8xf32>
    %246 = tpu.matmul %234, %241, %cst_110 {dimension_numbers = #tpu.dot_dimension_numbers<[1], [0], [0], [1], [0, 0, 1, 1], [], []>} : vector<8x32xbf16>, vector<32x8xbf16>, vector<8x8xf32> -> vector<8x8xf32>
    %247 = vector.shape_cast %246 : vector<8x8xf32> to vector<1x8x8xf32>
    %248 = arith.truncf %243 : vector<1x8x8xf32> to vector<1x8x8xbf16>
    %249 = arith.truncf %245 : vector<1x8x8xf32> to vector<1x8x8xbf16>
    "tpu.trace_start"() <{level = 10 : i32, message = "bqd,bkd->bqk"}> : () -> ()
    %cst_111 = arith.constant dense<0.000000e+00> : vector<1x8x8xf32>
    %250 = tpu.matmul %248, %249, %cst_111 {dimension_numbers = #tpu.dot_dimension_numbers<[2], [2], [1], [1], [0, 0, 0, 1, 1, 1], [0], [0]>} : vector<1x8x8xbf16>, vector<1x8x8xbf16>, vector<1x8x8xf32> -> vector<1x8x8xf32>
    "tpu.trace_stop"() : () -> ()
    %251 = arith.addf %250, %14 : vector<1x8x8xf32>
    %cst_112 = arith.constant dense<0xFF800000> : vector<1x8xf32>
    %252 = vector.multi_reduction <maximumf>, %251, %cst_112 [2] : vector<1x8x8xf32> to vector<1x8xf32>
    %253 = vector.shape_cast %252 : vector<1x8xf32> to vector<1x8x1xf32>
    %254 = vector.broadcast %253 : vector<1x8x1xf32> to vector<1x8x8xf32>
    %255 = arith.subf %251, %254 : vector<1x8x8xf32>
    %256 = math.exp %255 : vector<1x8x8xf32>
    %cst_113 = arith.constant dense<0.000000e+00> : vector<1x8xf32>
    %257 = vector.multi_reduction <add>, %256, %cst_113 [2] : vector<1x8x8xf32> to vector<1x8xf32>
    %258 = vector.shape_cast %257 : vector<1x8xf32> to vector<1x8x1xf32>
    %259 = tpu.reciprocal %258 {approx = true} : vector<1x8x1xf32> -> vector<1x8x1xf32>
    %260 = vector.broadcast %259 : vector<1x8x1xf32> to vector<1x8x8xf32>
    %261 = arith.mulf %256, %260 : vector<1x8x8xf32>
    %262 = arith.truncf %261 : vector<1x8x8xf32> to vector<1x8x8xbf16>
    %263 = arith.truncf %247 : vector<1x8x8xf32> to vector<1x8x8xbf16>
    "tpu.trace_start"() <{level = 10 : i32, message = "bqk,bkd->bqd"}> : () -> ()
    %cst_114 = arith.constant dense<0.000000e+00> : vector<1x8x8xf32>
    %264 = tpu.matmul %262, %263, %cst_114 {dimension_numbers = #tpu.dot_dimension_numbers<[2], [1], [1], [2], [0, 0, 0, 1, 1, 2], [0], [0]>} : vector<1x8x8xbf16>, vector<1x8x8xbf16>, vector<1x8x8xf32> -> vector<1x8x8xf32>
    "tpu.trace_stop"() : () -> ()
    %c4_115 = arith.constant 4 : index
    %c0_116 = arith.constant 0 : index
    %c0_117 = arith.constant 0 : index
    %265 = vector.load %arg5[%c4_115, %c0_116, %c0_117] : memref<8x8x32xbf16, #tpu.memory_space<vmem>>, vector<1x8x32xbf16>
    %266 = vector.shape_cast %265 : vector<1x8x32xbf16> to vector<8x32xbf16>
    %267 = vector.shape_cast %264 : vector<1x8x8xf32> to vector<8x8xf32>
    %268 = arith.truncf %267 : vector<8x8xf32> to vector<8x8xbf16>
    %cst_118 = arith.constant dense<0.000000e+00> : vector<8x32xf32>
    %269 = tpu.matmul %268, %266, %cst_118 {dimension_numbers = #tpu.dot_dimension_numbers<[1], [0], [0], [1], [0, 0, 1, 1], [], []>} : vector<8x8xbf16>, vector<8x32xbf16>, vector<8x32xf32> -> vector<8x32xf32>
    %270 = arith.addf %235, %269 : vector<8x32xf32>
    %c13 = arith.constant 13 : index
    %c0_119 = arith.constant 0 : index
    %c0_120 = arith.constant 0 : index
    %271 = vector.load %arg4[%c13, %c0_119, %c0_120] : memref<24x32x8xbf16, #tpu.memory_space<vmem>>, vector<1x32x8xbf16>
    %272 = vector.shape_cast %271 : vector<1x32x8xbf16> to vector<32x8xbf16>
    %c17 = arith.constant 17 : index
    %c0_121 = arith.constant 0 : index
    %c0_122 = arith.constant 0 : index
    %273 = vector.load %arg4[%c17, %c0_121, %c0_122] : memref<24x32x8xbf16, #tpu.memory_space<vmem>>, vector<1x32x8xbf16>
    %274 = vector.shape_cast %273 : vector<1x32x8xbf16> to vector<32x8xbf16>
    %c21 = arith.constant 21 : index
    %c0_123 = arith.constant 0 : index
    %c0_124 = arith.constant 0 : index
    %275 = vector.load %arg4[%c21, %c0_123, %c0_124] : memref<24x32x8xbf16, #tpu.memory_space<vmem>>, vector<1x32x8xbf16>
    %276 = vector.shape_cast %275 : vector<1x32x8xbf16> to vector<32x8xbf16>
    %cst_125 = arith.constant dense<0.000000e+00> : vector<8x8xf32>
    %277 = tpu.matmul %19, %272, %cst_125 {dimension_numbers = #tpu.dot_dimension_numbers<[1], [0], [0], [1], [0, 0, 1, 1], [], []>} : vector<8x32xbf16>, vector<32x8xbf16>, vector<8x8xf32> -> vector<8x8xf32>
    %278 = vector.shape_cast %277 : vector<8x8xf32> to vector<1x8x8xf32>
    %cst_126 = arith.constant dense<0.000000e+00> : vector<8x8xf32>
    %279 = tpu.matmul %234, %274, %cst_126 {dimension_numbers = #tpu.dot_dimension_numbers<[1], [0], [0], [1], [0, 0, 1, 1], [], []>} : vector<8x32xbf16>, vector<32x8xbf16>, vector<8x8xf32> -> vector<8x8xf32>
    %280 = vector.shape_cast %279 : vector<8x8xf32> to vector<1x8x8xf32>
    %cst_127 = arith.constant dense<0.000000e+00> : vector<8x8xf32>
    %281 = tpu.matmul %234, %276, %cst_127 {dimension_numbers = #tpu.dot_dimension_numbers<[1], [0], [0], [1], [0, 0, 1, 1], [], []>} : vector<8x32xbf16>, vector<32x8xbf16>, vector<8x8xf32> -> vector<8x8xf32>
    %282 = vector.shape_cast %281 : vector<8x8xf32> to vector<1x8x8xf32>
    %283 = arith.truncf %278 : vector<1x8x8xf32> to vector<1x8x8xbf16>
    %284 = arith.truncf %280 : vector<1x8x8xf32> to vector<1x8x8xbf16>
    "tpu.trace_start"() <{level = 10 : i32, message = "bqd,bkd->bqk"}> : () -> ()
    %cst_128 = arith.constant dense<0.000000e+00> : vector<1x8x8xf32>
    %285 = tpu.matmul %283, %284, %cst_128 {dimension_numbers = #tpu.dot_dimension_numbers<[2], [2], [1], [1], [0, 0, 0, 1, 1, 1], [0], [0]>} : vector<1x8x8xbf16>, vector<1x8x8xbf16>, vector<1x8x8xf32> -> vector<1x8x8xf32>
    "tpu.trace_stop"() : () -> ()
    %286 = arith.addf %285, %14 : vector<1x8x8xf32>
    %cst_129 = arith.constant dense<0xFF800000> : vector<1x8xf32>
    %287 = vector.multi_reduction <maximumf>, %286, %cst_129 [2] : vector<1x8x8xf32> to vector<1x8xf32>
    %288 = vector.shape_cast %287 : vector<1x8xf32> to vector<1x8x1xf32>
    %289 = vector.broadcast %288 : vector<1x8x1xf32> to vector<1x8x8xf32>
    %290 = arith.subf %286, %289 : vector<1x8x8xf32>
    %291 = math.exp %290 : vector<1x8x8xf32>
    %cst_130 = arith.constant dense<0.000000e+00> : vector<1x8xf32>
    %292 = vector.multi_reduction <add>, %291, %cst_130 [2] : vector<1x8x8xf32> to vector<1x8xf32>
    %293 = vector.shape_cast %292 : vector<1x8xf32> to vector<1x8x1xf32>
    %294 = tpu.reciprocal %293 {approx = true} : vector<1x8x1xf32> -> vector<1x8x1xf32>
    %295 = vector.broadcast %294 : vector<1x8x1xf32> to vector<1x8x8xf32>
    %296 = arith.mulf %291, %295 : vector<1x8x8xf32>
    %297 = arith.truncf %296 : vector<1x8x8xf32> to vector<1x8x8xbf16>
    %298 = arith.truncf %282 : vector<1x8x8xf32> to vector<1x8x8xbf16>
    "tpu.trace_start"() <{level = 10 : i32, message = "bqk,bkd->bqd"}> : () -> ()
    %cst_131 = arith.constant dense<0.000000e+00> : vector<1x8x8xf32>
    %299 = tpu.matmul %297, %298, %cst_131 {dimension_numbers = #tpu.dot_dimension_numbers<[2], [1], [1], [2], [0, 0, 0, 1, 1, 2], [0], [0]>} : vector<1x8x8xbf16>, vector<1x8x8xbf16>, vector<1x8x8xf32> -> vector<1x8x8xf32>
    "tpu.trace_stop"() : () -> ()
    %c5_132 = arith.constant 5 : index
    %c0_133 = arith.constant 0 : index
    %c0_134 = arith.constant 0 : index
    %300 = vector.load %arg5[%c5_132, %c0_133, %c0_134] : memref<8x8x32xbf16, #tpu.memory_space<vmem>>, vector<1x8x32xbf16>
    %301 = vector.shape_cast %300 : vector<1x8x32xbf16> to vector<8x32xbf16>
    %302 = vector.shape_cast %299 : vector<1x8x8xf32> to vector<8x8xf32>
    %303 = arith.truncf %302 : vector<8x8xf32> to vector<8x8xbf16>
    %cst_135 = arith.constant dense<0.000000e+00> : vector<8x32xf32>
    %304 = tpu.matmul %303, %301, %cst_135 {dimension_numbers = #tpu.dot_dimension_numbers<[1], [0], [0], [1], [0, 0, 1, 1], [], []>} : vector<8x8xbf16>, vector<8x32xbf16>, vector<8x32xf32> -> vector<8x32xf32>
    %305 = arith.addf %270, %304 : vector<8x32xf32>
    %c14 = arith.constant 14 : index
    %c0_136 = arith.constant 0 : index
    %c0_137 = arith.constant 0 : index
    %306 = vector.load %arg4[%c14, %c0_136, %c0_137] : memref<24x32x8xbf16, #tpu.memory_space<vmem>>, vector<1x32x8xbf16>
    %307 = vector.shape_cast %306 : vector<1x32x8xbf16> to vector<32x8xbf16>
    %c18 = arith.constant 18 : index
    %c0_138 = arith.constant 0 : index
    %c0_139 = arith.constant 0 : index
    %308 = vector.load %arg4[%c18, %c0_138, %c0_139] : memref<24x32x8xbf16, #tpu.memory_space<vmem>>, vector<1x32x8xbf16>
    %309 = vector.shape_cast %308 : vector<1x32x8xbf16> to vector<32x8xbf16>
    %c22 = arith.constant 22 : index
    %c0_140 = arith.constant 0 : index
    %c0_141 = arith.constant 0 : index
    %310 = vector.load %arg4[%c22, %c0_140, %c0_141] : memref<24x32x8xbf16, #tpu.memory_space<vmem>>, vector<1x32x8xbf16>
    %311 = vector.shape_cast %310 : vector<1x32x8xbf16> to vector<32x8xbf16>
    %cst_142 = arith.constant dense<0.000000e+00> : vector<8x8xf32>
    %312 = tpu.matmul %19, %307, %cst_142 {dimension_numbers = #tpu.dot_dimension_numbers<[1], [0], [0], [1], [0, 0, 1, 1], [], []>} : vector<8x32xbf16>, vector<32x8xbf16>, vector<8x8xf32> -> vector<8x8xf32>
    %313 = vector.shape_cast %312 : vector<8x8xf32> to vector<1x8x8xf32>
    %cst_143 = arith.constant dense<0.000000e+00> : vector<8x8xf32>
    %314 = tpu.matmul %234, %309, %cst_143 {dimension_numbers = #tpu.dot_dimension_numbers<[1], [0], [0], [1], [0, 0, 1, 1], [], []>} : vector<8x32xbf16>, vector<32x8xbf16>, vector<8x8xf32> -> vector<8x8xf32>
    %315 = vector.shape_cast %314 : vector<8x8xf32> to vector<1x8x8xf32>
    %cst_144 = arith.constant dense<0.000000e+00> : vector<8x8xf32>
    %316 = tpu.matmul %234, %311, %cst_144 {dimension_numbers = #tpu.dot_dimension_numbers<[1], [0], [0], [1], [0, 0, 1, 1], [], []>} : vector<8x32xbf16>, vector<32x8xbf16>, vector<8x8xf32> -> vector<8x8xf32>
    %317 = vector.shape_cast %316 : vector<8x8xf32> to vector<1x8x8xf32>
    %318 = arith.truncf %313 : vector<1x8x8xf32> to vector<1x8x8xbf16>
    %319 = arith.truncf %315 : vector<1x8x8xf32> to vector<1x8x8xbf16>
    "tpu.trace_start"() <{level = 10 : i32, message = "bqd,bkd->bqk"}> : () -> ()
    %cst_145 = arith.constant dense<0.000000e+00> : vector<1x8x8xf32>
    %320 = tpu.matmul %318, %319, %cst_145 {dimension_numbers = #tpu.dot_dimension_numbers<[2], [2], [1], [1], [0, 0, 0, 1, 1, 1], [0], [0]>} : vector<1x8x8xbf16>, vector<1x8x8xbf16>, vector<1x8x8xf32> -> vector<1x8x8xf32>
    "tpu.trace_stop"() : () -> ()
    %321 = arith.addf %320, %14 : vector<1x8x8xf32>
    %cst_146 = arith.constant dense<0xFF800000> : vector<1x8xf32>
    %322 = vector.multi_reduction <maximumf>, %321, %cst_146 [2] : vector<1x8x8xf32> to vector<1x8xf32>
    %323 = vector.shape_cast %322 : vector<1x8xf32> to vector<1x8x1xf32>
    %324 = vector.broadcast %323 : vector<1x8x1xf32> to vector<1x8x8xf32>
    %325 = arith.subf %321, %324 : vector<1x8x8xf32>
    %326 = math.exp %325 : vector<1x8x8xf32>
    %cst_147 = arith.constant dense<0.000000e+00> : vector<1x8xf32>
    %327 = vector.multi_reduction <add>, %326, %cst_147 [2] : vector<1x8x8xf32> to vector<1x8xf32>
    %328 = vector.shape_cast %327 : vector<1x8xf32> to vector<1x8x1xf32>
    %329 = tpu.reciprocal %328 {approx = true} : vector<1x8x1xf32> -> vector<1x8x1xf32>
    %330 = vector.broadcast %329 : vector<1x8x1xf32> to vector<1x8x8xf32>
    %331 = arith.mulf %326, %330 : vector<1x8x8xf32>
    %332 = arith.truncf %331 : vector<1x8x8xf32> to vector<1x8x8xbf16>
    %333 = arith.truncf %317 : vector<1x8x8xf32> to vector<1x8x8xbf16>
    "tpu.trace_start"() <{level = 10 : i32, message = "bqk,bkd->bqd"}> : () -> ()
    %cst_148 = arith.constant dense<0.000000e+00> : vector<1x8x8xf32>
    %334 = tpu.matmul %332, %333, %cst_148 {dimension_numbers = #tpu.dot_dimension_numbers<[2], [1], [1], [2], [0, 0, 0, 1, 1, 2], [0], [0]>} : vector<1x8x8xbf16>, vector<1x8x8xbf16>, vector<1x8x8xf32> -> vector<1x8x8xf32>
    "tpu.trace_stop"() : () -> ()
    %c6_149 = arith.constant 6 : index
    %c0_150 = arith.constant 0 : index
    %c0_151 = arith.constant 0 : index
    %335 = vector.load %arg5[%c6_149, %c0_150, %c0_151] : memref<8x8x32xbf16, #tpu.memory_space<vmem>>, vector<1x8x32xbf16>
    %336 = vector.shape_cast %335 : vector<1x8x32xbf16> to vector<8x32xbf16>
    %337 = vector.shape_cast %334 : vector<1x8x8xf32> to vector<8x8xf32>
    %338 = arith.truncf %337 : vector<8x8xf32> to vector<8x8xbf16>
    %cst_152 = arith.constant dense<0.000000e+00> : vector<8x32xf32>
    %339 = tpu.matmul %338, %336, %cst_152 {dimension_numbers = #tpu.dot_dimension_numbers<[1], [0], [0], [1], [0, 0, 1, 1], [], []>} : vector<8x8xbf16>, vector<8x32xbf16>, vector<8x32xf32> -> vector<8x32xf32>
    %340 = arith.addf %305, %339 : vector<8x32xf32>
    %c15 = arith.constant 15 : index
    %c0_153 = arith.constant 0 : index
    %c0_154 = arith.constant 0 : index
    %341 = vector.load %arg4[%c15, %c0_153, %c0_154] : memref<24x32x8xbf16, #tpu.memory_space<vmem>>, vector<1x32x8xbf16>
    %342 = vector.shape_cast %341 : vector<1x32x8xbf16> to vector<32x8xbf16>
    %c19 = arith.constant 19 : index
    %c0_155 = arith.constant 0 : index
    %c0_156 = arith.constant 0 : index
    %343 = vector.load %arg4[%c19, %c0_155, %c0_156] : memref<24x32x8xbf16, #tpu.memory_space<vmem>>, vector<1x32x8xbf16>
    %344 = vector.shape_cast %343 : vector<1x32x8xbf16> to vector<32x8xbf16>
    %c23 = arith.constant 23 : index
    %c0_157 = arith.constant 0 : index
    %c0_158 = arith.constant 0 : index
    %345 = vector.load %arg4[%c23, %c0_157, %c0_158] : memref<24x32x8xbf16, #tpu.memory_space<vmem>>, vector<1x32x8xbf16>
    %346 = vector.shape_cast %345 : vector<1x32x8xbf16> to vector<32x8xbf16>
    %cst_159 = arith.constant dense<0.000000e+00> : vector<8x8xf32>
    %347 = tpu.matmul %19, %342, %cst_159 {dimension_numbers = #tpu.dot_dimension_numbers<[1], [0], [0], [1], [0, 0, 1, 1], [], []>} : vector<8x32xbf16>, vector<32x8xbf16>, vector<8x8xf32> -> vector<8x8xf32>
    %348 = vector.shape_cast %347 : vector<8x8xf32> to vector<1x8x8xf32>
    %cst_160 = arith.constant dense<0.000000e+00> : vector<8x8xf32>
    %349 = tpu.matmul %234, %344, %cst_160 {dimension_numbers = #tpu.dot_dimension_numbers<[1], [0], [0], [1], [0, 0, 1, 1], [], []>} : vector<8x32xbf16>, vector<32x8xbf16>, vector<8x8xf32> -> vector<8x8xf32>
    %350 = vector.shape_cast %349 : vector<8x8xf32> to vector<1x8x8xf32>
    %cst_161 = arith.constant dense<0.000000e+00> : vector<8x8xf32>
    %351 = tpu.matmul %234, %346, %cst_161 {dimension_numbers = #tpu.dot_dimension_numbers<[1], [0], [0], [1], [0, 0, 1, 1], [], []>} : vector<8x32xbf16>, vector<32x8xbf16>, vector<8x8xf32> -> vector<8x8xf32>
    %352 = vector.shape_cast %351 : vector<8x8xf32> to vector<1x8x8xf32>
    %353 = arith.truncf %348 : vector<1x8x8xf32> to vector<1x8x8xbf16>
    %354 = arith.truncf %350 : vector<1x8x8xf32> to vector<1x8x8xbf16>
    "tpu.trace_start"() <{level = 10 : i32, message = "bqd,bkd->bqk"}> : () -> ()
    %cst_162 = arith.constant dense<0.000000e+00> : vector<1x8x8xf32>
    %355 = tpu.matmul %353, %354, %cst_162 {dimension_numbers = #tpu.dot_dimension_numbers<[2], [2], [1], [1], [0, 0, 0, 1, 1, 1], [0], [0]>} : vector<1x8x8xbf16>, vector<1x8x8xbf16>, vector<1x8x8xf32> -> vector<1x8x8xf32>
    "tpu.trace_stop"() : () -> ()
    %356 = arith.addf %355, %14 : vector<1x8x8xf32>
    %cst_163 = arith.constant dense<0xFF800000> : vector<1x8xf32>
    %357 = vector.multi_reduction <maximumf>, %356, %cst_163 [2] : vector<1x8x8xf32> to vector<1x8xf32>
    %358 = vector.shape_cast %357 : vector<1x8xf32> to vector<1x8x1xf32>
    %359 = vector.broadcast %358 : vector<1x8x1xf32> to vector<1x8x8xf32>
    %360 = arith.subf %356, %359 : vector<1x8x8xf32>
    %361 = math.exp %360 : vector<1x8x8xf32>
    %cst_164 = arith.constant dense<0.000000e+00> : vector<1x8xf32>
    %362 = vector.multi_reduction <add>, %361, %cst_164 [2] : vector<1x8x8xf32> to vector<1x8xf32>
    %363 = vector.shape_cast %362 : vector<1x8xf32> to vector<1x8x1xf32>
    %364 = tpu.reciprocal %363 {approx = true} : vector<1x8x1xf32> -> vector<1x8x1xf32>
    %365 = vector.broadcast %364 : vector<1x8x1xf32> to vector<1x8x8xf32>
    %366 = arith.mulf %361, %365 : vector<1x8x8xf32>
    %367 = arith.truncf %366 : vector<1x8x8xf32> to vector<1x8x8xbf16>
    %368 = arith.truncf %352 : vector<1x8x8xf32> to vector<1x8x8xbf16>
    "tpu.trace_start"() <{level = 10 : i32, message = "bqk,bkd->bqd"}> : () -> ()
    %cst_165 = arith.constant dense<0.000000e+00> : vector<1x8x8xf32>
    %369 = tpu.matmul %367, %368, %cst_165 {dimension_numbers = #tpu.dot_dimension_numbers<[2], [1], [1], [2], [0, 0, 0, 1, 1, 2], [0], [0]>} : vector<1x8x8xbf16>, vector<1x8x8xbf16>, vector<1x8x8xf32> -> vector<1x8x8xf32>
    "tpu.trace_stop"() : () -> ()
    %c7_166 = arith.constant 7 : index
    %c0_167 = arith.constant 0 : index
    %c0_168 = arith.constant 0 : index
    %370 = vector.load %arg5[%c7_166, %c0_167, %c0_168] : memref<8x8x32xbf16, #tpu.memory_space<vmem>>, vector<1x8x32xbf16>
    %371 = vector.shape_cast %370 : vector<1x8x32xbf16> to vector<8x32xbf16>
    %372 = vector.shape_cast %369 : vector<1x8x8xf32> to vector<8x8xf32>
    %373 = arith.truncf %372 : vector<8x8xf32> to vector<8x8xbf16>
    %cst_169 = arith.constant dense<0.000000e+00> : vector<8x32xf32>
    %374 = tpu.matmul %373, %371, %cst_169 {dimension_numbers = #tpu.dot_dimension_numbers<[1], [0], [0], [1], [0, 0, 1, 1], [], []>} : vector<8x8xbf16>, vector<8x32xbf16>, vector<8x32xf32> -> vector<8x32xf32>
    %375 = arith.addf %340, %374 : vector<8x32xf32>
    %376 = arith.addf %225, %375 : vector<8x32xf32>
    %cst_170 = arith.constant dense<0.000000e+00> : vector<8xf32>
    %377 = vector.multi_reduction <add>, %376, %cst_170 [1] : vector<8x32xf32> to vector<8xf32>
    %378 = vector.shape_cast %377 : vector<8xf32> to vector<8x1xf32>
    %cst_171 = arith.constant 3.200000e+01 : f32
    %379 = vector.broadcast %cst_171 : f32 to vector<8x1xf32>
    %380 = arith.divf %378, %379 : vector<8x1xf32>
    %381 = vector.broadcast %380 : vector<8x1xf32> to vector<8x32xf32>
    %382 = arith.subf %376, %381 : vector<8x32xf32>
    %383 = arith.mulf %382, %382 : vector<8x32xf32>
    %cst_172 = arith.constant dense<0.000000e+00> : vector<8xf32>
    %384 = vector.multi_reduction <add>, %383, %cst_172 [1] : vector<8x32xf32> to vector<8xf32>
    %385 = vector.shape_cast %384 : vector<8xf32> to vector<8x1xf32>
    %cst_173 = arith.constant 3.200000e+01 : f32
    %386 = vector.broadcast %cst_173 : f32 to vector<8x1xf32>
    %387 = arith.divf %385, %386 : vector<8x1xf32>
    %cst_174 = arith.constant 9.99999997E-7 : f32
    %388 = vector.broadcast %cst_174 : f32 to vector<8x1xf32>
    %389 = arith.addf %387, %388 : vector<8x1xf32>
    %390 = math.rsqrt %389 : vector<8x1xf32>
    %391 = vector.broadcast %390 : vector<8x1xf32> to vector<8x32xf32>
    %392 = arith.mulf %382, %391 : vector<8x32xf32>
    %393 = vector.broadcast %230 : vector<1x32xf32> to vector<8x32xf32>
    %394 = arith.mulf %392, %393 : vector<8x32xf32>
    %395 = vector.broadcast %231 : vector<1x32xf32> to vector<8x32xf32>
    %396 = arith.addf %394, %395 : vector<8x32xf32>
    %397 = arith.truncf %396 : vector<8x32xf32> to vector<8x32xbf16>
    %c1_175 = arith.constant 1 : index
    %c0_176 = arith.constant 0 : index
    %c0_177 = arith.constant 0 : index
    %398 = vector.load %arg6[%c1_175, %c0_176, %c0_177] : memref<2x32x32xbf16, #tpu.memory_space<vmem>>, vector<1x32x32xbf16>
    %399 = vector.shape_cast %398 : vector<1x32x32xbf16> to vector<32x32xbf16>
    %cst_178 = arith.constant dense<0.000000e+00> : vector<8x32xf32>
    %400 = tpu.matmul %397, %399, %cst_178 {dimension_numbers = #tpu.dot_dimension_numbers<[1], [0], [0], [1], [0, 0, 1, 1], [], []>} : vector<8x32xbf16>, vector<32x32xbf16>, vector<8x32xf32> -> vector<8x32xf32>
    %401 = vector.broadcast %228 : vector<1x32xf32> to vector<8x32xf32>
    %402 = arith.addf %400, %401 : vector<8x32xf32>
    %cst_179 = arith.constant 0.000000e+00 : f32
    %403 = vector.broadcast %cst_179 : f32 to vector<8x32xf32>
    %404 = arith.maximumf %402, %403 : vector<8x32xf32>
    %405 = arith.truncf %404 : vector<8x32xf32> to vector<8x32xbf16>
    %c1_180 = arith.constant 1 : index
    %c0_181 = arith.constant 0 : index
    %c0_182 = arith.constant 0 : index
    %406 = vector.load %arg7[%c1_180, %c0_181, %c0_182] : memref<2x32x32xbf16, #tpu.memory_space<vmem>>, vector<1x32x32xbf16>
    %407 = vector.shape_cast %406 : vector<1x32x32xbf16> to vector<32x32xbf16>
    %cst_183 = arith.constant dense<0.000000e+00> : vector<8x32xf32>
    %408 = tpu.matmul %405, %407, %cst_183 {dimension_numbers = #tpu.dot_dimension_numbers<[1], [0], [0], [1], [0, 0, 1, 1], [], []>} : vector<8x32xbf16>, vector<32x32xbf16>, vector<8x32xf32> -> vector<8x32xf32>
    %409 = vector.broadcast %229 : vector<1x32xf32> to vector<8x32xf32>
    %410 = arith.addf %408, %409 : vector<8x32xf32>
    %411 = arith.addf %396, %410 : vector<8x32xf32>
    %cst_184 = arith.constant dense<0.000000e+00> : vector<8xf32>
    %412 = vector.multi_reduction <add>, %411, %cst_184 [1] : vector<8x32xf32> to vector<8xf32>
    %413 = vector.shape_cast %412 : vector<8xf32> to vector<8x1xf32>
    %cst_185 = arith.constant 3.200000e+01 : f32
    %414 = vector.broadcast %cst_185 : f32 to vector<8x1xf32>
    %415 = arith.divf %413, %414 : vector<8x1xf32>
    %416 = vector.broadcast %415 : vector<8x1xf32> to vector<8x32xf32>
    %417 = arith.subf %411, %416 : vector<8x32xf32>
    %418 = arith.mulf %417, %417 : vector<8x32xf32>
    %cst_186 = arith.constant dense<0.000000e+00> : vector<8xf32>
    %419 = vector.multi_reduction <add>, %418, %cst_186 [1] : vector<8x32xf32> to vector<8xf32>
    %420 = vector.shape_cast %419 : vector<8xf32> to vector<8x1xf32>
    %cst_187 = arith.constant 3.200000e+01 : f32
    %421 = vector.broadcast %cst_187 : f32 to vector<8x1xf32>
    %422 = arith.divf %420, %421 : vector<8x1xf32>
    %cst_188 = arith.constant 9.99999997E-7 : f32
    %423 = vector.broadcast %cst_188 : f32 to vector<8x1xf32>
    %424 = arith.addf %422, %423 : vector<8x1xf32>
    %425 = math.rsqrt %424 : vector<8x1xf32>
    %426 = vector.broadcast %425 : vector<8x1xf32> to vector<8x32xf32>
    %427 = arith.mulf %417, %426 : vector<8x32xf32>
    %428 = vector.broadcast %232 : vector<1x32xf32> to vector<8x32xf32>
    %429 = arith.mulf %427, %428 : vector<8x32xf32>
    %430 = vector.broadcast %233 : vector<1x32xf32> to vector<8x32xf32>
    %431 = arith.addf %429, %430 : vector<8x32xf32>
    %432 = vector.shape_cast %431 : vector<8x32xf32> to vector<1x8x32xf32>
    %433 = vector.extract_strided_slice %432 {offsets = [0, 7, 0], sizes = [1, 1, 32], strides = [1, 1, 1]} : vector<1x8x32xf32> to vector<1x1x32xf32>
    %434 = vector.shape_cast %433 : vector<1x1x32xf32> to vector<1x32xf32>
    %c0_189 = arith.constant 0 : index
    %c0_190 = arith.constant 0 : index
    %435 = vector.load %arg9[%c0_189, %c0_190] : memref<1x32xf32, #tpu.memory_space<vmem>>, vector<1x32xf32>
    %436 = arith.mulf %434, %435 : vector<1x32xf32>
    %cst_191 = arith.constant dense<0.000000e+00> : vector<1xf32>
    %437 = vector.multi_reduction <add>, %436, %cst_191 [1] : vector<1x32xf32> to vector<1xf32>
    %438 = vector.shape_cast %437 : vector<1xf32> to vector<1x1xf32>
    %c0_192 = arith.constant 0 : index
    %c0_193 = arith.constant 0 : index
    %439 = vector.load %arg10[%c0_192, %c0_193] : memref<1x1xf32, #tpu.memory_space<vmem>>, vector<1x1xf32>
    %440 = arith.addf %438, %439 : vector<1x1xf32>
    %441 = vector.shape_cast %440 : vector<1x1xf32> to vector<1x1x1xf32>
    %442 = vector.shape_cast %441 : vector<1x1x1xf32> to vector<1x1x1xf32>
    %443 = vector.broadcast %442 : vector<1x1x1xf32> to vector<1x1x128xf32>
    %c0_194 = arith.constant 0 : index
    %c0_195 = arith.constant 0 : index
    %c0_196 = arith.constant 0 : index
    %444 = vector.load %arg11[%c0_194, %c0_195, %c0_196] : memref<1x1x128xf32, #tpu.memory_space<vmem>>, vector<1x1x128xf32>
    tpu.vector_store %arg11[%c0_194, %c0_195, %c0_196], %443 {strides = array<i32>} : memref<1x1x128xf32, #tpu.memory_space<vmem>>, vector<1x1x128xf32>,
    return
  }
  func.func @transform_0(%arg0: i32, %arg1: memref<2xi32, #tpu.memory_space<smem>>) -> (i32, i32, i32) {
    %c0_i32 = arith.constant 0 : i32
    %c0_i32_0 = arith.constant 0 : i32
    %c0_i32_1 = arith.constant 0 : i32
    return %arg0, %c0_i32, %c0_i32_0 : i32, i32, i32
  }
  func.func @transform_1(%arg0: i32, %arg1: memref<2xi32, #tpu.memory_space<smem>>) -> (i32, i32, i32) {
    %c0_i32 = arith.constant 0 : i32
    %c0_i32_0 = arith.constant 0 : i32
    %c0_i32_1 = arith.constant 0 : i32
    return %arg0, %c0_i32, %c0_i32_0 : i32, i32, i32
  }
  func.func @transform_2(%arg0: i32, %arg1: memref<2xi32, #tpu.memory_space<smem>>) -> (i32, i32, i32) {
    %c0_i32 = arith.constant 0 : i32
    %c0_i32_0 = arith.constant 0 : i32
    %c0_i32_1 = arith.constant 0 : i32
    %c0_i32_2 = arith.constant 0 : i32
    return %c0_i32, %c0_i32_0, %c0_i32_1 : i32, i32, i32
  }
  func.func @transform_3(%arg0: i32, %arg1: memref<2xi32, #tpu.memory_space<smem>>) -> (i32, i32, i32) {
    %c0_i32 = arith.constant 0 : i32
    %c0_i32_0 = arith.constant 0 : i32
    %c0_i32_1 = arith.constant 0 : i32
    %c0_i32_2 = arith.constant 0 : i32
    return %c0_i32, %c0_i32_0, %c0_i32_1 : i32, i32, i32
  }
  func.func @transform_4(%arg0: i32, %arg1: memref<2xi32, #tpu.memory_space<smem>>) -> (i32, i32, i32) {
    %c0_i32 = arith.constant 0 : i32
    %c0_i32_0 = arith.constant 0 : i32
    %c0_i32_1 = arith.constant 0 : i32
    %c0_i32_2 = arith.constant 0 : i32
    return %c0_i32, %c0_i32_0, %c0_i32_1 : i32, i32, i32
  }
  func.func @transform_5(%arg0: i32, %arg1: memref<2xi32, #tpu.memory_space<smem>>) -> (i32, i32, i32) {
    %c0_i32 = arith.constant 0 : i32
    %c0_i32_0 = arith.constant 0 : i32
    %c0_i32_1 = arith.constant 0 : i32
    %c0_i32_2 = arith.constant 0 : i32
    return %c0_i32, %c0_i32_0, %c0_i32_1 : i32, i32, i32
  }
  func.func @transform_6(%arg0: i32, %arg1: memref<2xi32, #tpu.memory_space<smem>>) -> (i32, i32, i32) {
    %c0_i32 = arith.constant 0 : i32
    %c0_i32_0 = arith.constant 0 : i32
    %c0_i32_1 = arith.constant 0 : i32
    %c0_i32_2 = arith.constant 0 : i32
    return %c0_i32, %c0_i32_0, %c0_i32_1 : i32, i32, i32
  }
  func.func @transform_7(%arg0: i32, %arg1: memref<2xi32, #tpu.memory_space<smem>>) -> (i32, i32) {
    %c0_i32 = arith.constant 0 : i32
    %c0_i32_0 = arith.constant 0 : i32
    %c0_i32_1 = arith.constant 0 : i32
    return %c0_i32, %c0_i32_0 : i32, i32
  }
  func.func @transform_8(%arg0: i32, %arg1: memref<2xi32, #tpu.memory_space<smem>>) -> (i32, i32) {
    %c0_i32 = arith.constant 0 : i32
    %c0_i32_0 = arith.constant 0 : i32
    %c0_i32_1 = arith.constant 0 : i32
    return %c0_i32, %c0_i32_0 : i32, i32
  }
  func.func @transform_9(%arg0: i32, %arg1: memref<2xi32, #tpu.memory_space<smem>>) -> (i32, i32, i32) {
    %c0_i32 = arith.constant 0 : i32
    %c0_i32_0 = arith.constant 0 : i32
    %c0_i32_1 = arith.constant 0 : i32
    return %arg0, %c0_i32, %c0_i32_0 : i32, i32, i32
  }
}

</mosaic_0001>

<bundles_post_ra>
// kernel: tpu_custom_call.1
= control target key start
LH: loop header
LB: loop body
LE: loop exit
PB: predicated region body
PF: predicated region fallthrough
CT: control target
= control target key end

     0   :  { %s5173_s0 = inlined_call_operand.vmem [shape: s32[2], index: 0, kind: input, shape index: {}]   ;;  %s5174_s1 = inlined_call_operand.vmem [shape: f32[2,8,32], index: 1, kind: input, shape index: {}]   ;;  %s5175_s2 = inlined_call_operand.vmem [shape: f32[2,8,32], index: 2, kind: input, shape index: {}]   ;;  %s5176_s3 = inlined_call_operand.vmem [shape: bf16[24,32,8], index: 3, kind: input, shape index: {}]   ;;  %s5177_s4 = inlined_call_operand.vmem [shape: bf16[8,8,32], index: 4, kind: input, shape index: {}]   ;;  %s5178_s5 = inlined_call_operand.vmem [shape: bf16[2,32,32], index: 5, kind: input, shape index: {}]   ;;  %s5179_s6 = inlined_call_operand.vmem [shape: bf16[2,32,32], index: 6, kind: input, shape index: {}]   ;;  %s5180_s7 = inlined_call_operand.vmem [shape: f32[2,6,32], index: 7, kind: input, shape index: {}]   ;;  %s5181_s8 = inlined_call_operand.vmem [shape: f32[1,32], index: 8, kind: input, shape index: {}]   ;;  %s5182_s10 = inlined_call_operand.hbm [shape: f32[2,1,128], index: 10, kind: output, shape index: {}]   ;;  %s5183_s9 = inlined_call_operand.<no memory space> [shape: f32[1,1], index: 9, kind: input, shape index: {}]  }
   0x1   :  { %s15_s15 = sshll.u32 %s5173_s0, 4  ;;  %v19_v0 = vstv %s5183_s9  ;;  %s16_s15 = int_to_ptr.vmem [resolvable:$true] %s15_s15 }
   0x2   :  { %20 = vst [vmem:[#allocation4] sm:$0x1] %v19_v0  ;;  %s4335_s18 = scalar_lea.vmem %s16_s15, 16  ;;  %p4340_p1 = scmp.lt.s32.totalorder %s16_s15, %s16_s15 }
   0x3   :  { %p4336_p0 = scmp.ne.s32.totalorder %s16_s15, %s4335_s18  ;;  %p4341_p2 = scmp.lt.s32.totalorder %s4335_s18, %s4335_s18 }
   0x5   :  { %p4342_p3 = por %p4341_p2, %p4340_p1 }
   0x7   :  { %p4343_p4 = pnand %p4342_p3, %p4336_p0 }
   0x9   :  { %4346 = shalt.err (!%p4343_p4)  }
   0xa   :  { %s4413_s19 = smov [#allocation3]  }
   0xb   :  { %18 = dma.vmem_to_smem %s16_s15, 16, %s4413_s19, [#allocation2] }
   0xc   :  { %4391 = dma.done.wait [#allocation2], 16 }
   0xd   :  { %4392 = vsyncadd [#allocation2], 4294967280 }
   0xe   :  { %22 = sfence }
   0xf   :  { %23 = vsyncpa [#allocation6], 0 }
  0x10   :  { %25 = vsyncpa [#allocation6 + $0x1], 0  ;;  %s4480_s0 = smov 0   ;;  %s4482_s20 = smov 0  }
  0x11   :  { %s4484_s9 = smov 0   ;;  %s4486_s21 = smov 0  }
  0x12 LB: > { %s4501_s22 = sadd.s32 4294967295, %s4411_s21   ;;  %s3466_s23 = sadd.s32 4294967294, %s4411_s21   ;;  %s4411_s21 = sphi %s4486_s21, %s5189_s21   ;;  %s4407_s9 = sphi %s4484_s9, %s5188_s9   ;;  %s4403_s20 = sphi %s4482_s20, %s5187_s20   ;;  %s4399_s0 = sphi %s4480_s0, %s5186_s0  }
  0x13   : > { %s4505_s24 = sadd.s32 1, %s4411_s21   ;;  %s237_s25 = sadd.s32 1, %s4407_s9 }
  0x14   : > { %s234_s26 = ssub.s32 %s4411_s21, %s4505_s24  ;;  %p247_p5 = scmp.ne.s32.totalorder %s4407_s9, %s4403_s20 }
  0x15   : > { %p235_p6 = scmp.eq.s32.totalorder %s234_s26, 0  ;;  %p248_p7 = scmp.eq.s32.totalorder %s4501_s22, 1 }
  0x16   : > { %p253_p8 = scmp.ne.s32.totalorder %s4403_s20, %s4399_s0  ;;  %p254_p9 = scmp.eq.s32.totalorder %s3466_s23, 1 }
  0x17   : > { %s4516_s27 = scalar_select %p235_p6, %s4407_s9, %s237_s25  }
  0x18   : > { %p4518_p10 = por %p248_p7, %p247_p5  ;;  %p4522_p11 = por %p254_p9, %p253_p8 }
  0x19   : > { %p3469_p12 = scmp.ge.s32.totalorder %s4411_s21, 1  ;;  %p307_p13 = scmp.lt.s32.totalorder %s4411_s21, 3 }
  0x1b   : > { %p308_p0 = pnand %p3469_p12, %p307_p13 }
  0x1c   : > { %v4239_v1 = vld [vmem:[%s5176_s3 + $0x40] sm:$0xff] (!%p308_p0)   ;;  %v4414_v2 = vmov (!%p308_p0), 0.0   ;;  %v4240_v3 = vld [vmem:[%s5176_s3 + $0x48] sm:$0xff] (!%p308_p0)   ;;  %vm4415_vm0 = vmmov (!%p308_p0), 0   ;;  %p345_p1 = scmp.lt.s32.totalorder (!%p308_p0), %s4501_s22, 1  ;;  %vm396_vm1 = vcmask (!%p308_p0), 261120   ;;  %v354_v23 = vlaneseq (!%p308_p0) }
  0x1d   : > { %311 = sbr.rel (%p308_p0) target bundleno = 10222 (0x27ee), region = 56  ;;  %3833 = vmatprep.subr.bf16.mxu1 (!%p308_p0), %v4414_v2  ;;  %3825 = vmatprep.subr.bf16.mxu0 (!%p308_p0), %v4414_v2  ;;  %v4241_v4 = vld [vmem:[%s5176_s3] sm:$0xff] (!%p308_p0)   ;;  %v4242_v5 = vld [vmem:[%s5176_s3 + $0x8] sm:$0xff] (!%p308_p0)   ;;  %vm549_vm2 = vcmask (!%p308_p0), 64512   ;;  %s359_s17 = sld [smem:[#allocation3 + %s4501_s22]] (!%p308_p0)  ;;  %vm612_vm6 = vcmask (!%p308_p0), 1043456  }
  0x1e   : > { %3834 = vmatpush3.bf16.msra.mxu1 (!%p308_p0), %v4239_v1  ;;  %3837 = vmatprep.mubr.msk.bf16.mxu1 (!%p308_p0), %vm4415_vm0, %v4414_v2  ;;  %v4243_v21 = vld [vmem:[%s5176_s3 + $0x80] sm:$0xff] (!%p308_p0)   ;;  %v4244_v22 = vld [vmem:[%s5176_s3 + $0x88] sm:$0xff] (!%p308_p0)   ;;  %v4592_v24 = vshrl.u32 (!%p308_p0), %v354_v23, 7  ;;  %v357_v25 = vand.u32 (!%p308_p0), 127, %v354_v23  ;;  %v4416_v27 = vmov (!%p308_p0), -1e+09  }
  0x1f   : > { %3835 = vmatprep.subr.bf16.mxu1 (!%p308_p0), %v4414_v2  ;;  %3829 = vmatprep.mubr.msk.bf16.mxu0 (!%p308_p0), %vm4415_vm0, %v4414_v2  ;;  %v4247_v46 = vld [vmem:[%s5176_s3 + $0x10] sm:$0xff] (!%p308_p0)   ;;  %v4248_v47 = vld [vmem:[%s5176_s3 + $0x18] sm:$0xff] (!%p308_p0)   ;;  %vm3368_vm7 = vcmask (!%p308_p0), 261127   ;;  %s343_s11 = sand.u32 (!%p308_p0), 1, %s4403_s20   ;;  %s3690_s14 = sshll.u32 (!%p308_p0), %s4501_s22, 4 }
  0x20   : > { %3826 = vmatpush3.bf16.msra.mxu0 (!%p308_p0), %v4241_v4  ;;  %vm358_vm3 = vcmp.le.s32.totalorder (!%p308_p0), %v357_v25, %v4592_v24  ;;  %v4245_v51 = vld [vmem:[%s5176_s3 + $0x50] sm:$0xff] (!%p308_p0)   ;;  %v4246_v53 = vld [vmem:[%s5176_s3 + $0x58] sm:$0xff] (!%p308_p0)   ;;  %s4418_s23 = smov (!%p308_p0), [#allocation5]  }
  0x21   : > { %3827 = vmatprep.subr.bf16.mxu0 (!%p308_p0), %v4414_v2 }
  0x22   : > { %3836 = vmatpush3.bf16.msra.mxu1 (!%p308_p0), %v4240_v3 }
  0x23   : > { %3849 = vmatprep.subr.bf16.mxu1 (!%p308_p0), %v4414_v2  ;;  %s360_s18 = ssub.s32 (!%p308_p0), 8, %s359_s17  ;;  %s5133_s17 = scalar_lea.hbm (!%p308_p0), %s5182_s10, %s3690_s14 }
  0x24   : > { %s346_s16 = scalar_select %p345_p1, %s4501_s22, 1  ;;  %3828 = vmatpush3.bf16.msra.mxu0 %v4242_v5  ;;  %v361_v26 = vstv %s360_s18 }
  0x25   : > { %3841 = vmatprep.subr.bf16.mxu0 %v4414_v2  ;;  %vm362_vm4 = vcmp.ge.s32.totalorder %v357_v25, %v361_v26  ;;  %s3387_s18 = scalar_lea.sflag [#allocation6], %s343_s11  ;;  %s4351_s22 = sshll.u32 %s4418_s23, 4  ;;  %s4352_s22 = int_to_ptr.vmem [resolvable:$false] %s4351_s22 }
  0x26   : > { %s3470_s19 = sshll.u32 %s346_s16, 3  ;;  %vm363_vm5 = vmand %vm358_vm3, %vm362_vm4  ;;  %s4353_s25 = scalar_lea.vmem %s4352_s22, 32 }
  0x27   : > { %s352_s26 = scalar_lea.vmem %s5175_s2, %s3470_s19  ;;  %s348_s12 = scalar_lea.vmem %s5174_s1, %s3470_s19  ;;  %v4595_v28 = vsel %vm363_vm5, 0.0, %v4416_v27 }
  0x28   : > { %v4557_v6 = vld [vmem:[%s352_s26] sm:$0xff] }
  0x29   : > { %v365_v7 = vld [vmem:[%s348_s12] sm:$0xff]  ;;  %v4561_v8 = vpack.c.bf16 %v4557_v6, %v4557_v6  ;;  %s344_s12 = scalar_lea.vmem [#allocation5], %s343_s11 }
  0x2a   : > { %v4563_v9 = vpack.c.bf16 %v365_v7, %v365_v7  ;;  %v4249_v7 = vld [vmem:[%s5176_s3 + $0x90] sm:$0xff]   ;;  %s3399_s13 = sshll.u32 %s344_s12, 4  ;;  %s5128_s13 = int_to_ptr.vmem [resolvable:$true] %s3399_s13 }
  0x2b   : > { %3838 = vmatmul.mubr.msk.bf16.vlgmr.msra.gmra.mrb[0].mxu1 %vm396_vm1, %v4561_v8  ;;  %s4347_s19 = scalar_lea.vmem %s5128_s13, 16  ;;  %p4354_p5 = scmp.lt.s32.totalorder %s5128_s13, %s4352_s22 }
  0x2c   : > { %3830 = vmatmul.mubr.msk.bf16.vlgmr.msra.gmra.mrb[0].mxu0 %vm396_vm1, %v4563_v9  ;;  %3851 = vmatprep.mubr.msk.bf16.mxu1 %vm4415_vm0, %v4414_v2  ;;  %p4348_p2 = scmp.ne.s32.totalorder %s5128_s13, %s4347_s19  ;;  %p4355_p6 = scmp.lt.s32.totalorder %s4353_s25, %s4347_s19 }
  0x2d   : > { %3845 = vmatprep.mubr.msk.bf16.mxu0 %vm4415_vm0, %v4414_v2  ;;  %3842 = vmatpush3.bf16.msra.mxu0 %v4243_v21 }
  0x2e   : > { %3843 = vmatprep.subr.bf16.mxu0 %v4414_v2  ;;  %p4349_p3 = pnand %p4348_p2, %p4518_p10  ;;  %p4356_p7 = por %p4355_p6, %p4354_p5 }
  0x30   : > { %p4350_p4 = pneg %p4349_p3 }
  0x31   : > { %3844 = vmatpush3.bf16.msra.mxu0 %v4244_v22 }
  0x32   : > { %3855 = vmatprep.subr.bf16.mxu0 %v4414_v2  ;;  %p4357_p8 = pnand %p4356_p7, %p4350_p4 }
  0x34   : > { %3846 = vmatmul.mubr.msk.bf16.vlgmr.msra.gmra.mrb[4].mxu0 %vm396_vm1, %v4561_v8 }
  0x35   : > { %3857 = vmatprep.mubr.msk.bf16.mxu0 %vm4415_vm0, %v4414_v2 }
  0xfe   : > { %v489_v10 = vpop.f32.mrb[0].mxu1 }
  0xff   : > { %v434_v11 = vpop.f32.mrb[0].mxu0  ;;  %v548_v12 = vpack.c.bf16 %v489_v10, %v489_v10  ;;  %v3839_v13 = vpop.f32.mrb[1].mxu1  ;;  %v4250_v10 = vld [vmem:[%s5176_s3 + $0x98] sm:$0xff]  }
 0x100   : > { %v3831_v14 = vpop.f32.mrb[1].mxu0  ;;  %v492_v15 = vpop.f32.mrb[2].mxu1  ;;  %v547_v20 = vpack.c.bf16 %v434_v11, %v434_v11 }
 0x101   : > { %v437_v16 = vpop.f32.mrb[2].mxu0  ;;  %v554_v17 = vsel %vm549_vm2, %v548_v12, 0  ;;  %v3840_v18 = vpop.f32.mrb[3].mxu1 }
 0x102   : > { %v3832_v19 = vpop.f32.mrb[3].mxu0  ;;  %3850 = vmatpush3.bf16.xpose.msra.mxu1 %v554_v17 }
 0x103   : > { %3861 = vmatprep.subr.bf16.mxu1 %v4414_v2 }
 0x107   : > { %v541_v40 = vpop.f32.mrb[4].mxu0 }
 0x108   : > { %v3847_v41 = vpop.f32.mrb[5].mxu0  ;;  %v608_v44 = vpack.c.bf16 %v541_v40, %v541_v40  ;;  %v4252_v40 = vld [vmem:[%s5176_s3 + $0x68] sm:$0xff]  }
 0x109   : > { %3852 = vmatmul.mubr.msk.bf16.vlgmr.msra.gmra.mrb[4].mxu1 %vm549_vm2, %v547_v20  ;;  %v544_v42 = vpop.f32.mrb[6].mxu0 }
 0x10a   : > { %3865 = vmatprep.mubr.msk.bf16.mxu1 %vm4415_vm0, %v4414_v2  ;;  %v3848_v43 = vpop.f32.mrb[7].mxu0  ;;  %v614_v45 = vsel %vm612_vm6, %v608_v44, 0  ;;  %3862 = vmatpush3.bf16.msra.mxu1 %v4247_v46  ;;  %v4253_v42 = vld [vmem:[%s5176_s3 + $0x20] sm:$0xff]  }
 0x10b   : > { %3856 = vmatpush3.bf16.msra.mxu0 %v614_v45  ;;  %3863 = vmatprep.subr.bf16.mxu1 %v4414_v2 }
 0x10c   : > { %3869 = vmatprep.subr.bf16.mxu0 %v4414_v2 }
 0x10e   : > { %3864 = vmatpush3.bf16.msra.mxu1 %v4248_v47  ;;  %v4254_v47 = vld [vmem:[%s5176_s3 + $0x28] sm:$0xff]  }
 0x10f   : > { %3877 = vmatprep.subr.bf16.mxu1 %v4414_v2 }
 0x111   : > { %3866 = vmatmul.mubr.msk.bf16.vlgmr.msra.gmra.mrb[8].mxu1 %vm396_vm1, %v4563_v9 }
 0x112   : > { %3881 = vmatprep.mubr.msk.bf16.mxu1 %vm4415_vm0, %v4414_v2  ;;  %3878 = vmatpush3.bf16.msra.mxu1 %v4249_v7  ;;  %v4256_v7 = vld [vmem:[%s5176_s3 + $0xa8] sm:$0xff]  }
 0x113   : > { %3879 = vmatprep.subr.bf16.mxu1 %v4414_v2 }
 0x116   : > { %3880 = vmatpush3.bf16.msra.mxu1 %v4250_v10 }
 0x117   : > { %3891 = vmatprep.subr.bf16.mxu1 %v4414_v2 }
 0x119   : > { %3882 = vmatmul.mubr.msk.bf16.vlgmr.msra.gmra.mrb[12].mxu1 %vm396_vm1, %v4561_v8 }
 0x11a   : > { %3893 = vmatprep.mubr.msk.bf16.mxu1 %vm4415_vm0, %v4414_v2 }
 0x1dc   : > { %v590_v29 = vpop.f32.mrb[4].mxu1 }
 0x1dd   : > { %v591_v30 = vadd.f32 %v590_v29, %v4595_v28  ;;  %v3853_v31 = vpop.f32.mrb[5].mxu1 }
 0x1de   : > { %v593_v32 = vpop.f32.mrb[6].mxu1 }
 0x1df   : > { %v3854_v33 = vpop.f32.mrb[7].mxu1  ;;  %v596_v34 = vsel %vm549_vm2, %v591_v30, -inf }
 0x1e0   : > { %597 = vmax.xlane.f32.xlu0 %v596_v34  ;;  %v656_v34 = vld [vmem:[%s5177_s4] sm:$0xf] }
 0x1e4   : > { %v719_v54 = vpop.f32.mrb[8].mxu1 }
 0x1e5   : > { %v3867_v55 = vpop.f32.mrb[9].mxu1  ;;  %v829_v5 = vpack.c.bf16 %v719_v54, %v719_v54 }
 0x1e6   : > { %v722_v56 = vpop.f32.mrb[10].mxu1 }
 0x1e7   : > { %v3868_v57 = vpop.f32.mrb[11].mxu1 }
 0x1ec   : > { %v823_v22 = vpop.f32.mrb[12].mxu1 }
 0x1ed   : > { %v3883_v23 = vpop.f32.mrb[13].mxu1  ;;  %v889_v27 = vpack.c.bf16 %v823_v22, %v823_v22 }
 0x1ee   : > { %v826_v25 = vpop.f32.mrb[14].mxu1 }
 0x1ef   : > { %v3884_v26 = vpop.f32.mrb[15].mxu1  ;;  %v894_v29 = vsel %vm612_vm6, %v889_v27, 0 }
 0x1f0   : > { %3892 = vmatpush3.bf16.msra.mxu1 %v894_v29  ;;  %v3540_v29 = vld [vmem:[%s5177_s4 + $0x8] sm:$0xf] }
 0x1f1   : > { %3903 = vmatprep.subr.bf16.mxu1 %v4414_v2 }
 0x26d   : > { %v598_v35 = vpop.xlane.xlu0 %597 }
 0x26e   : > { %v599_v36 = vsub.f32 %v591_v30, %v598_v35  ;;  %v3514_v30 = vld [vmem:[%s5177_s4 + $0x4] sm:$0xf] }
 0x26f   : > { %v943_v31 = vsel %vm612_vm6, %v3514_v30, 0  ;;  %v1316_v30 = vsel %vm612_vm6, %v3540_v29, 0 }
 0x270   : > { %v600_v37 = vmul.f32 1.442695, %v599_v36 }
 0x272   : > { %4295 = vpow2.f32 %v600_v37  ;;  %v989_v37 = vsel %vm612_vm6, %v656_v34, 0 }
 0x27c   : > { %v4296_v38 = vpop.eup %4295 }
 0x27d   : > { %v602_v39 = vsel %vm549_vm2, %v4296_v38, 0.0 }
 0x27e   : > { %603 = vadd.xlane.f32.xlu0 %v602_v39 }
 0x30b   : > { %v604_v48 = vpop.xlane.xlu0 %603 }
 0x30c   : > { %4297 = vrcp.f32 %v604_v48 }
 0x316   : > { %v4298_v49 = vpop.eup %4297 }
 0x317   : > { %v606_v50 = vmul.f32 %v4298_v49, %v4296_v38  ;;  %v4251_v38 = vld [vmem:[%s5176_s3 + $0x60] sm:$0xff]  }
 0x319   : > { %v607_v52 = vpack.c.bf16 %v606_v50, %v606_v50 }
 0x31b   : > { %3858 = vmatmul.mubr.msk.bf16.vlgmr.msra.gmra.mrb[8].mxu0 %vm549_vm2, %v607_v52 }
 0x31c   : > { %3870 = vmatpush3.bf16.msra.mxu0 %v4245_v51  ;;  %3873 = vmatprep.mubr.msk.bf16.mxu0 %vm4415_vm0, %v4414_v2 }
 0x31d   : > { %3871 = vmatprep.subr.bf16.mxu0 %v4414_v2 }
 0x320   : > { %3872 = vmatpush3.bf16.msra.mxu0 %v4246_v53 }
 0x321   : > { %3885 = vmatprep.subr.bf16.mxu0 %v4414_v2 }
 0x323   : > { %3874 = vmatmul.mubr.msk.bf16.vlgmr.msra.gmra.mrb[12].mxu0 %vm396_vm1, %v4561_v8 }
 0x324   : > { %3887 = vmatprep.mubr.msk.bf16.mxu0 %vm4415_vm0, %v4414_v2 }
 0x3ee   : > { %v4629_v58 = vpop.f32.mrb[8].mxu0 }
 0x3ef   : > { %v3859_v59 = vpop.f32.mrb[9].mxu0  ;;  %v657_v39 = vpack.c.bf16 %v4629_v58, %v4629_v58 }
 0x3f0   : > { %v653_v60 = vpop.f32.mrb[10].mxu0 }
 0x3f1   : > { %v3860_v61 = vpop.f32.mrb[11].mxu0 }
 0x3f6   : > { %v771_v62 = vpop.f32.mrb[12].mxu0 }
 0x3f7   : > { %v830_v63 = vpack.c.bf16 %v771_v62, %v771_v62  ;;  %v3875_v0 = vpop.f32.mrb[13].mxu0 }
 0x3f8   : > { %v774_v1 = vpop.f32.mrb[14].mxu0 }
 0x3f9   : > { %v835_v3 = vsel %vm549_vm2, %v830_v63, 0  ;;  %v3876_v4 = vpop.f32.mrb[15].mxu0 }
 0x3fa   : > { %3886 = vmatpush3.bf16.xpose.msra.mxu0 %v835_v3 }
 0x3fb   : > { %3897 = vmatprep.subr.bf16.mxu0 %v4414_v2 }
 0x401   : > { %3888 = vmatmul.mubr.msk.bf16.vlgmr.msra.gmra.mrb[16].mxu0 %vm549_vm2, %v829_v5  ;;  %v4255_v5 = vld [vmem:[%s5176_s3 + $0xa0] sm:$0xff]  }
 0x402   : > { %3899 = vmatprep.mubr.msk.bf16.mxu0 %vm4415_vm0, %v4414_v2  ;;  %3898 = vmatpush3.bf16.msra.mxu0 %v943_v31 }
 0x403   : > { %3909 = vmatprep.subr.bf16.mxu0 %v4414_v2 }
 0x4d4   : > { %v871_v11 = vpop.f32.mrb[16].mxu0 }
 0x4d5   : > { %v872_v12 = vadd.f32 %v871_v11, %v4595_v28  ;;  %v3889_v13 = vpop.f32.mrb[17].mxu0 }
 0x4d6   : > { %v874_v14 = vpop.f32.mrb[18].mxu0 }
 0x4d7   : > { %v3890_v15 = vpop.f32.mrb[19].mxu0  ;;  %v877_v16 = vsel %vm549_vm2, %v872_v12, -inf }
 0x4d8   : > { %878 = vmax.xlane.f32.xlu1 %v877_v16 }
 0x565   : > { %v879_v17 = vpop.xlane.xlu1 %878 }
 0x566   : > { %v880_v18 = vsub.f32 %v872_v12, %v879_v17 }
 0x568   : > { %v881_v19 = vmul.f32 1.442695, %v880_v18 }
 0x56a   : > { %4299 = vpow2.f32 %v881_v19 }
 0x574   : > { %v4300_v20 = vpop.eup %4299 }
 0x575   : > { %v883_v21 = vsel %vm549_vm2, %v4300_v20, 0.0 }
 0x576   : > { %884 = vadd.xlane.f32.xlu1 %v883_v21 }
 0x603   : > { %v885_v32 = vpop.xlane.xlu1 %884 }
 0x604   : > { %4301 = vrcp.f32 %v885_v32 }
 0x60e   : > { %v4302_v33 = vpop.eup %4301 }
 0x60f   : > { %v887_v35 = vmul.f32 %v4302_v33, %v4300_v20 }
 0x611   : > { %v888_v36 = vpack.c.bf16 %v887_v35, %v887_v35  ;;  %v4259_v35 = vld [vmem:[%s5176_s3 + $0x30] sm:$0xff]  }
 0x613   : > { %3894 = vmatmul.mubr.msk.bf16.vlgmr.msra.gmra.mrb[16].mxu1 %vm549_vm2, %v888_v36  ;;  %v4260_v36 = vld [vmem:[%s5176_s3 + $0x38] sm:$0xff]  }
 0x614   : > { %3904 = vmatpush3.bf16.msra.mxu1 %v989_v37  ;;  %3905 = vmatprep.mubr.msk.bf16.mxu1 %vm4415_vm0, %v4414_v2 }
 0x615   : > { %3917 = vmatprep.subr.bf16.mxu1 %v4414_v2 }
 0x61b   : > { %3906 = vmatmul.mubr.msk.bf16.vlgmr.msra.gmra.mrb[20].mxu1 %vm549_vm2, %v657_v39 }
 0x61c   : > { %3918 = vmatpush3.bf16.msra.mxu1 %v4251_v38  ;;  %3921 = vmatprep.mubr.msk.bf16.mxu1 %vm4415_vm0, %v4414_v2  ;;  %v4257_v38 = vld [vmem:[%s5176_s3 + $0x70] sm:$0xff]  }
 0x61d   : > { %3919 = vmatprep.subr.bf16.mxu1 %v4414_v2 }
 0x620   : > { %3920 = vmatpush3.bf16.msra.mxu1 %v4252_v40 }
 0x621   : > { %3933 = vmatprep.subr.bf16.mxu1 %v4414_v2 }
 0x623   : > { %3922 = vmatmul.mubr.msk.bf16.vlgmr.msra.gmra.mrb[24].mxu1 %vm396_vm1, %v4561_v8 }
 0x624   : > { %3935 = vmatprep.mubr.msk.bf16.mxu1 %vm4415_vm0, %v4414_v2 }
 0x6e6   : > { %v930_v41 = vpop.f32.mrb[16].mxu1 }
 0x6e7   : > { %v938_v43 = vpack.c.bf16 %v930_v41, %v930_v41  ;;  %v3895_v44 = vpop.f32.mrb[17].mxu1 }
 0x6e8   : > { %v933_v45 = vpop.f32.mrb[18].mxu1 }
 0x6e9   : > { %v3896_v46 = vpop.f32.mrb[19].mxu1  ;;  %3900 = vmatmul.mubr.msk.bf16.vlgmr.msra.gmra.mrb[20].mxu0 %vm549_vm2, %v938_v43  ;;  %v4258_v43 = vld [vmem:[%s5176_s3 + $0x78] sm:$0xff]  }
 0x6ea   : > { %3910 = vmatpush3.bf16.msra.mxu0 %v4253_v42  ;;  %3913 = vmatprep.mubr.msk.bf16.mxu0 %vm4415_vm0, %v4414_v2 }
 0x6eb   : > { %3911 = vmatprep.subr.bf16.mxu0 %v4414_v2 }
 0x6ee   : > { %v1025_v48 = vpop.f32.mrb[20].mxu1  ;;  %3912 = vmatpush3.bf16.msra.mxu0 %v4254_v47 }
 0x6ef   : > { %v3907_v49 = vpop.f32.mrb[21].mxu1  ;;  %3925 = vmatprep.subr.bf16.mxu0 %v4414_v2 }
 0x6f0   : > { %v1028_v50 = vpop.f32.mrb[22].mxu1 }
 0x6f1   : > { %v3908_v51 = vpop.f32.mrb[23].mxu1  ;;  %3914 = vmatmul.mubr.msk.bf16.vlgmr.msra.gmra.mrb[24].mxu0 %vm396_vm1, %v4563_v9 }
 0x6f2   : > { %3929 = vmatprep.mubr.msk.bf16.mxu0 %vm4415_vm0, %v4414_v2  ;;  %3926 = vmatpush3.bf16.msra.mxu0 %v4255_v5 }
 0x6f3   : > { %3927 = vmatprep.subr.bf16.mxu0 %v4414_v2 }
 0x6f6   : > { %v1144_v52 = vpop.f32.mrb[24].mxu1  ;;  %3928 = vmatpush3.bf16.msra.mxu0 %v4256_v7 }
 0x6f7   : > { %v1203_v53 = vpack.c.bf16 %v1144_v52, %v1144_v52  ;;  %v3923_v54 = vpop.f32.mrb[25].mxu1  ;;  %3939 = vmatprep.subr.bf16.mxu0 %v4414_v2 }
 0x6f8   : > { %v1147_v55 = vpop.f32.mrb[26].mxu1 }
 0x6f9   : > { %v1208_v56 = vsel %vm549_vm2, %v1203_v53, 0  ;;  %v3924_v57 = vpop.f32.mrb[27].mxu1  ;;  %3930 = vmatmul.mubr.msk.bf16.vlgmr.msra.gmra.mrb[28].mxu0 %vm396_vm1, %v4561_v8 }
 0x6fa   : > { %3934 = vmatpush3.bf16.xpose.msra.mxu1 %v1208_v56  ;;  %3941 = vmatprep.mubr.msk.bf16.mxu0 %vm4415_vm0, %v4414_v2 }
 0x6fb   : > { %3945 = vmatprep.subr.bf16.mxu1 %v4414_v2 }
 0x7bc   : > { %v979_v58 = vpop.f32.mrb[20].mxu0 }
 0x7bd   : > { %v4700_v59 = vadd.f32 %v1025_v48, %v979_v58  ;;  %v3901_v60 = vpop.f32.mrb[21].mxu0 }
 0x7be   : > { %v982_v61 = vpop.f32.mrb[22].mxu0 }
 0x7bf   : > { %v3902_v62 = vpop.f32.mrb[23].mxu0  ;;  %v4262_v61 = vld [vmem:[%s5176_s3 + $0xb8] sm:$0xff]  }
 0x7c4   : > { %v1092_v63 = vpop.f32.mrb[24].mxu0 }
 0x7c5   : > { %v1202_v0 = vpack.c.bf16 %v1092_v63, %v1092_v63  ;;  %v3915_v1 = vpop.f32.mrb[25].mxu0 }
 0x7c6   : > { %v1095_v3 = vpop.f32.mrb[26].mxu0 }
 0x7c7   : > { %v3916_v4 = vpop.f32.mrb[27].mxu0  ;;  %3936 = vmatmul.mubr.msk.bf16.vlgmr.msra.gmra.mrb[28].mxu1 %vm549_vm2, %v1202_v0 }
 0x7c8   : > { %3947 = vmatprep.mubr.msk.bf16.mxu1 %vm4415_vm0, %v4414_v2  ;;  %3946 = vmatpush3.bf16.msra.mxu1 %v1316_v30 }
 0x7c9   : > { %3959 = vmatprep.subr.bf16.mxu1 %v4414_v2 }
 0x7cc   : > { %v1196_v21 = vpop.f32.mrb[28].mxu0 }
 0x7cd   : > { %v3931_v22 = vpop.f32.mrb[29].mxu0  ;;  %v1262_v26 = vpack.c.bf16 %v1196_v21, %v1196_v21 }
 0x7ce   : > { %v1199_v23 = vpop.f32.mrb[30].mxu0 }
 0x7cf   : > { %v3932_v25 = vpop.f32.mrb[31].mxu0  ;;  %v1267_v27 = vsel %vm612_vm6, %v1262_v26, 0 }
 0x7d0   : > { %3940 = vmatpush3.bf16.msra.mxu0 %v1267_v27 }
 0x7d1   : > { %3951 = vmatprep.subr.bf16.mxu0 %v4414_v2 }
 0x89a   : > { %v1244_v10 = vpop.f32.mrb[28].mxu1 }
 0x89b   : > { %v1245_v11 = vadd.f32 %v1244_v10, %v4595_v28  ;;  %v3937_v12 = vpop.f32.mrb[29].mxu1 }
 0x89c   : > { %v1247_v13 = vpop.f32.mrb[30].mxu1 }
 0x89d   : > { %v3938_v14 = vpop.f32.mrb[31].mxu1  ;;  %v1250_v15 = vsel %vm549_vm2, %v1245_v11, -inf }
 0x89e   : > { %1251 = vmax.xlane.f32.xlu0 %v1250_v15 }
 0x92b   : > { %v1252_v16 = vpop.xlane.xlu0 %1251 }
 0x92c   : > { %v1253_v17 = vsub.f32 %v1245_v11, %v1252_v16 }
 0x92e   : > { %v1254_v18 = vmul.f32 1.442695, %v1253_v17 }
 0x930   : > { %4303 = vpow2.f32 %v1254_v18  ;;  %v3565_v18 = vld [vmem:[%s5177_s4 + $0xc] sm:$0xf] }
 0x93a   : > { %v4304_v19 = vpop.eup %4303 }
 0x93b   : > { %v1256_v20 = vsel %vm549_vm2, %v4304_v19, 0.0 }
 0x93c   : > { %1257 = vadd.xlane.f32.xlu1 %v1256_v20 }
 0x9c9   : > { %v1258_v31 = vpop.xlane.xlu1 %1257 }
 0x9ca   : > { %4305 = vrcp.f32 %v1258_v31 }
 0x9d4   : > { %v4306_v32 = vpop.eup %4305 }
 0x9d5   : > { %v1260_v33 = vmul.f32 %v4306_v32, %v4304_v19  ;;  %v1644_v19 = vsel %vm612_vm6, %v3565_v18, 0 }
 0x9d7   : > { %v1261_v34 = vpack.c.bf16 %v1260_v33, %v1260_v33 }
 0x9d9   : > { %3942 = vmatmul.mubr.msk.bf16.vlgmr.msra.gmra.mrb[32].mxu0 %vm549_vm2, %v1261_v34 }
 0x9da   : > { %3955 = vmatprep.mubr.msk.bf16.mxu0 %vm4415_vm0, %v4414_v2  ;;  %3952 = vmatpush3.bf16.msra.mxu0 %v4259_v35 }
 0x9db   : > { %3953 = vmatprep.subr.bf16.mxu0 %v4414_v2 }
 0x9de   : > { %3954 = vmatpush3.bf16.msra.mxu0 %v4260_v36 }
 0x9df   : > { %3967 = vmatprep.subr.bf16.mxu0 %v4414_v2 }
 0x9e1   : > { %3956 = vmatmul.mubr.msk.bf16.vlgmr.msra.gmra.mrb[36].mxu0 %vm396_vm1, %v4563_v9 }
 0x9e2   : > { %3971 = vmatprep.mubr.msk.bf16.mxu0 %vm4415_vm0, %v4414_v2 }
 0xaac   : > { %v1303_v37 = vpop.f32.mrb[32].mxu0 }
 0xaad   : > { %v1311_v39 = vpack.c.bf16 %v1303_v37, %v1303_v37  ;;  %v3943_v40 = vpop.f32.mrb[33].mxu0 }
 0xaae   : > { %v1306_v41 = vpop.f32.mrb[34].mxu0 }
 0xaaf   : > { %v3944_v42 = vpop.f32.mrb[35].mxu0  ;;  %3948 = vmatmul.mubr.msk.bf16.vlgmr.msra.gmra.mrb[32].mxu1 %vm549_vm2, %v1311_v39 }
 0xab0   : > { %3960 = vmatpush3.bf16.msra.mxu1 %v4257_v38  ;;  %3963 = vmatprep.mubr.msk.bf16.mxu1 %vm4415_vm0, %v4414_v2 }
 0xab1   : > { %3961 = vmatprep.subr.bf16.mxu1 %v4414_v2 }
 0xab4   : > { %3962 = vmatpush3.bf16.msra.mxu1 %v4258_v43  ;;  %v1420_v44 = vpop.f32.mrb[36].mxu0  ;;  %v4263_v43 = vld [vmem:[%s5178_s5] sm:$0xff]  }
 0xab5   : > { %3975 = vmatprep.subr.bf16.mxu1 %v4414_v2  ;;  %v3957_v45 = vpop.f32.mrb[37].mxu0  ;;  %v1530_v60 = vpack.c.bf16 %v1420_v44, %v1420_v44 }
 0xab6   : > { %v1423_v46 = vpop.f32.mrb[38].mxu0 }
 0xab7   : > { %3964 = vmatmul.mubr.msk.bf16.vlgmr.msra.gmra.mrb[36].mxu1 %vm396_vm1, %v4561_v8  ;;  %v3958_v47 = vpop.f32.mrb[39].mxu0 }
 0xab8   : > { %3977 = vmatprep.mubr.msk.bf16.mxu1 %vm4415_vm0, %v4414_v2  ;;  %v1704_v47 = vsub.s32 2, %v4592_v24 }
 0xb82   : > { %v1352_v48 = vpop.f32.mrb[32].mxu1 }
 0xb83   : > { %v4758_v49 = vadd.f32 %v1352_v48, %v4700_v59  ;;  %v3949_v50 = vpop.f32.mrb[33].mxu1  ;;  %v4261_v59 = vld [vmem:[%s5176_s3 + $0xb0] sm:$0xff]   ;;  %v4809_v48 = vld [vmem:[%s5180_s7] sm:$0x3f] }
 0xb84   : > { %v1355_v51 = vpop.f32.mrb[34].mxu1  ;;  %3968 = vmatpush3.bf16.msra.mxu0 %v4261_v59  ;;  %v1705_v50 = vrot.slane %v4809_v48, %v1704_v47 }
 0xb85   : > { %v3950_v52 = vpop.f32.mrb[35].mxu1  ;;  %3969 = vmatprep.subr.bf16.mxu0 %v4414_v2 }
 0xb88   : > { %3970 = vmatpush3.bf16.msra.mxu0 %v4262_v61 }
 0xb89   : > { %3981 = vmatprep.subr.bf16.mxu0 %v4414_v2 }
 0xb8a   : > { %v1472_v53 = vpop.f32.mrb[36].mxu1 }
 0xb8b   : > { %v1531_v54 = vpack.c.bf16 %v1472_v53, %v1472_v53  ;;  %v3965_v55 = vpop.f32.mrb[37].mxu1  ;;  %3972 = vmatmul.mubr.msk.bf16.vlgmr.msra.gmra.mrb[40].mxu0 %vm396_vm1, %v4561_v8 }
 0xb8c   : > { %v1475_v56 = vpop.f32.mrb[38].mxu1  ;;  %3983 = vmatprep.mubr.msk.bf16.mxu0 %vm4415_vm0, %v4414_v2 }
 0xb8d   : > { %v1536_v57 = vsel %vm549_vm2, %v1531_v54, 0  ;;  %v3966_v58 = vpop.f32.mrb[39].mxu1 }
 0xb8e   : > { %3976 = vmatpush3.bf16.xpose.msra.mxu1 %v1536_v57  ;;  %v4265_v57 = vld [vmem:[%s5179_s6] sm:$0xff]   ;;  %v4266_v58 = vld [vmem:[%s5179_s6 + $0x8] sm:$0xff]  }
 0xb8f   : > { %3987 = vmatprep.subr.bf16.mxu1 %v4414_v2 }
 0xb95   : > { %3978 = vmatmul.mubr.msk.bf16.vlgmr.msra.gmra.mrb[40].mxu1 %vm549_vm2, %v1530_v60  ;;  %v1719_v60 = vsub.s32 0, %v4592_v24 }
 0xb96   : > { %3989 = vmatprep.mubr.msk.bf16.mxu1 %vm4415_vm0, %v4414_v2  ;;  %3988 = vmatpush3.bf16.msra.mxu1 %v1644_v19 }
 0xb97   : > { %4001 = vmatprep.subr.bf16.mxu1 %v4414_v2  ;;  %v1720_v59 = vrot.slane %v4809_v48, %v1719_v60 }
 0xc5e   : > { %v1524_v8 = vpop.f32.mrb[40].mxu0 }
 0xc5f   : > { %v3973_v13 = vpop.f32.mrb[41].mxu0  ;;  %v1590_v16 = vpack.c.bf16 %v1524_v8, %v1524_v8 }
 0xc60   : > { %v1527_v14 = vpop.f32.mrb[42].mxu0 }
 0xc61   : > { %v3974_v15 = vpop.f32.mrb[43].mxu0  ;;  %v1595_v17 = vsel %vm612_vm6, %v1590_v16, 0 }
 0xc62   : > { %3982 = vmatpush3.bf16.msra.mxu0 %v1595_v17 }
 0xc63   : > { %3993 = vmatprep.subr.bf16.mxu0 %v4414_v2 }
 0xc68   : > { %v1572_v62 = vpop.f32.mrb[40].mxu1 }
 0xc69   : > { %v1573_v63 = vadd.f32 %v1572_v62, %v4595_v28  ;;  %v3979_v0 = vpop.f32.mrb[41].mxu1 }
 0xc6a   : > { %v1575_v1 = vpop.f32.mrb[42].mxu1 }
 0xc6b   : > { %v3980_v3 = vpop.f32.mrb[43].mxu1  ;;  %v1578_v4 = vsel %vm549_vm2, %v1573_v63, -inf }
 0xc6c   : > { %1579 = vmax.xlane.f32.xlu0 %v1578_v4 }
 0xcf9   : > { %v1580_v5 = vpop.xlane.xlu0 %1579 }
 0xcfa   : > { %v1581_v7 = vsub.f32 %v1573_v63, %v1580_v5  ;;  %v1784_v5 = vsub.s32 1, %v4592_v24 }
 0xcfc   : > { %v1582_v10 = vmul.f32 1.442695, %v1581_v7  ;;  %v1785_v7 = vrot.slane %v4809_v48, %v1784_v5 }
 0xcfe   : > { %4307 = vpow2.f32 %v1582_v10 }
 0xd08   : > { %v4308_v11 = vpop.eup %4307 }
 0xd09   : > { %v1584_v12 = vsel %vm549_vm2, %v4308_v11, 0.0 }
 0xd0a   : > { %1585 = vadd.xlane.f32.xlu1 %v1584_v12 }
 0xd97   : > { %v1586_v20 = vpop.xlane.xlu1 %1585 }
 0xd98   : > { %4309 = vrcp.f32 %v1586_v20 }
 0xda2   : > { %v4310_v21 = vpop.eup %4309 }
 0xda3   : > { %v1588_v22 = vmul.f32 %v4310_v21, %v4308_v11  ;;  %v4267_v21 = vld [vmem:[%s5176_s3 + $0xc0] sm:$0xff]  }
 0xda5   : > { %v1589_v23 = vpack.c.bf16 %v1588_v22, %v1588_v22  ;;  %v4268_v22 = vld [vmem:[%s5176_s3 + $0xc8] sm:$0xff]  }
 0xda7   : > { %3984 = vmatmul.mubr.msk.bf16.vlgmr.msra.gmra.mrb[44].mxu0 %vm549_vm2, %v1589_v23  ;;  %v4269_v23 = vld [vmem:[%s5176_s3 + $0x100] sm:$0xff]  }
 0xda8   : > { %3997 = vmatprep.mubr.msk.bf16.mxu0 %vm4415_vm0, %v4414_v2  ;;  %3994 = vmatpush3.bf16.msra.mxu0 %v4263_v43 }
 0xda9   : > { %3995 = vmatprep.subr.bf16.mxu0 %v4414_v2 }
 0xe7a   : > { %v1631_v25 = vpop.f32.mrb[44].mxu0 }
 0xe7b   : > { %v1639_v26 = vpack.c.bf16 %v1631_v25, %v1631_v25  ;;  %v3985_v27 = vpop.f32.mrb[45].mxu0  ;;  %v4270_v25 = vld [vmem:[%s5176_s3 + $0x140] sm:$0xff]  }
 0xe7c   : > { %v1634_v29 = vpop.f32.mrb[46].mxu0  ;;  %v4272_v27 = vld [vmem:[%s5176_s3 + $0x148] sm:$0xff]  }
 0xe7d   : > { %v3986_v30 = vpop.f32.mrb[47].mxu0  ;;  %3990 = vmatmul.mubr.msk.bf16.vlgmr.msra.gmra.mrb[44].mxu1 %vm549_vm2, %v1639_v26  ;;  %v4271_v26 = vld [vmem:[%s5176_s3 + $0x108] sm:$0xff]  }
 0xe7e   : > { %4005 = vmatprep.mubr.msk.bf16.mxu1 %vm4415_vm0, %v4414_v2  ;;  %4002 = vmatpush3.bf16.msra.mxu1 %v4265_v57 }
 0xe7f   : > { %4003 = vmatprep.subr.bf16.mxu1 %v4414_v2 }
 0xe82   : > { %4004 = vmatpush3.bf16.msra.mxu1 %v4266_v58 }
 0xe83   : > { %4017 = vmatprep.subr.bf16.mxu1 %v4414_v2 }
 0xf50   : > { %v1680_v31 = vpop.f32.mrb[44].mxu1 }
 0xf51   : > { %v1686_v32 = vadd.f32 %v1680_v31, %v4758_v49  ;;  %v3991_v33 = vpop.f32.mrb[45].mxu1  ;;  %v1709_v49 = vsub.s32 3, %v4592_v24 }
 0xf52   : > { %v1683_v34 = vpop.f32.mrb[46].mxu1  ;;  %v1862_v33 = vsub.s32 5, %v4592_v24 }
 0xf53   : > { %v3992_v35 = vpop.f32.mrb[47].mxu1  ;;  %v1687_v36 = vadd.f32 %v1686_v32, %v4557_v6  ;;  %v4264_v6 = vld [vmem:[%s5178_s5 + $0x8] sm:$0xff]   ;;  %v1710_v53 = vrot.slane %v4809_v48, %v1709_v49  ;;  %v1857_v32 = vsub.s32 4, %v4592_v24 }
 0xf54   : > { %3996 = vmatpush3.bf16.msra.mxu0 %v4264_v6 }
 0xf55   : > { %v1688_v37 = vsel %vm396_vm1, %v1687_v36, 0.0  ;;  %4009 = vmatprep.subr.bf16.mxu0 %v4414_v2  ;;  %v1858_v34 = vrot.slane %v4809_v48, %v1857_v32 }
 0xf56   : > { %1689 = vadd.xlane.f32.xlu0 %v1688_v37 }
 0xfe3   : > { %v1690_v38 = vpop.xlane.xlu0 %1689 }
 0xfe4   : > { %v1692_v39 = vmul.f32 0.03125, %v1690_v38 }
 0xfe6   : > { %v1693_v40 = vsub.f32 %v1687_v36, %v1692_v39  ;;  %v1863_v36 = vrot.slane %v4809_v48, %v1862_v33 }
 0xfe8   : > { %v1694_v41 = vmul.f32 %v1693_v40, %v1693_v40 }
 0xfea   : > { %v1695_v42 = vsel %vm396_vm1, %v1694_v41, 0.0 }
 0xfeb   : > { %1696 = vadd.xlane.f32.xlu1 %v1695_v42 }
0x1078   : > { %v1697_v44 = vpop.xlane.xlu1 %1696 }
0x1079   : > { %v1698_v45 = vmul.f32 0.03125, %v1697_v44 }
0x107b   : > { %v1699_v46 = vadd.f32 1e-06, %v1698_v45 }
0x107d   : > { %4311 = vrsqrt.f32 %v1699_v46 }
0x1087   : > { %v4312_v51 = vpop.eup %4311 }
0x1088   : > { %v1701_v52 = vmul.f32 %v4312_v51, %v1693_v40 }
0x108a   : > { %v1706_v54 = vmul.f32 %v1705_v50, %v1701_v52 }
0x108c   : > { %v1711_v55 = vadd.f32 %v1710_v53, %v1706_v54 }
0x108e   : > { %v1712_v56 = vpack.c.bf16 %v1711_v55, %v1711_v55 }
0x1090   : > { %3998 = vmatmul.mubr.msk.bf16.vlgmr.msra.gmra.mrb[48].mxu0 %vm396_vm1, %v1712_v56 }
0x1091   : > { %4013 = vmatprep.mubr.msk.bf16.mxu0 %vm4415_vm0, %v4414_v2  ;;  %4010 = vmatpush3.bf16.msra.mxu0 %v4267_v21 }
0x1092   : > { %4011 = vmatprep.subr.bf16.mxu0 %v4414_v2 }
0x1095   : > { %4012 = vmatpush3.bf16.msra.mxu0 %v4268_v22 }
0x1096   : > { %4025 = vmatprep.subr.bf16.mxu0 %v4414_v2 }
0x1098   : > { %4014 = vmatmul.mubr.msk.bf16.vlgmr.msra.gmra.mrb[52].mxu0 %vm396_vm1, %v4563_v9 }
0x1099   : > { %4026 = vmatpush3.bf16.msra.mxu0 %v4270_v25  ;;  %4029 = vmatprep.mubr.msk.bf16.mxu0 %vm4415_vm0, %v4414_v2 }
0x109a   : > { %4027 = vmatprep.subr.bf16.mxu0 %v4414_v2 }
0x109d   : > { %4028 = vmatpush3.bf16.msra.mxu0 %v4272_v27 }
0x109e   : > { %4039 = vmatprep.subr.bf16.mxu0 %v4414_v2 }
0x1163   : > { %v1770_v61 = vpop.f32.mrb[48].mxu0 }
0x1164   : > { %v1771_v62 = vadd.f32 %v1770_v61, %v1720_v59  ;;  %v3999_v63 = vpop.f32.mrb[49].mxu0  ;;  %v4273_v59 = vld [vmem:[%s5176_s3 + $0xd0] sm:$0xff]   ;;  %v4274_v61 = vld [vmem:[%s5176_s3 + $0xd8] sm:$0xff]  }
0x1165   : > { %v1773_v0 = vpop.f32.mrb[50].mxu0  ;;  %v4276_v63 = vld [vmem:[%s5176_s3 + $0x158] sm:$0xff]  }
0x1166   : > { %v1776_v1 = vmax.f32 %v1771_v62, 0.0  ;;  %v4000_v3 = vpop.f32.mrb[51].mxu0  ;;  %v4275_v62 = vld [vmem:[%s5176_s3 + $0x150] sm:$0xff]  }
0x1168   : > { %v1777_v4 = vpack.c.bf16 %v1776_v1, %v1776_v1 }
0x116a   : > { %4006 = vmatmul.mubr.msk.bf16.vlgmr.msra.gmra.mrb[48].mxu1 %vm396_vm1, %v1777_v4 }
0x116b   : > { %4021 = vmatprep.mubr.msk.bf16.mxu1 %vm4415_vm0, %v4414_v2  ;;  %4018 = vmatpush3.bf16.msra.mxu1 %v4269_v23  ;;  %v1929_v41 = vpop.f32.mrb[52].mxu0 }
0x116c   : > { %4019 = vmatprep.subr.bf16.mxu1 %v4414_v2  ;;  %v4015_v42 = vpop.f32.mrb[53].mxu0  ;;  %v2042_v58 = vpack.c.bf16 %v1929_v41, %v1929_v41 }
0x116d   : > { %v1932_v43 = vpop.f32.mrb[54].mxu0 }
0x116e   : > { %v4016_v6 = vpop.f32.mrb[55].mxu0 }
0x116f   : > { %4020 = vmatpush3.bf16.msra.mxu1 %v4271_v26 }
0x1170   : > { %4033 = vmatprep.subr.bf16.mxu1 %v4414_v2 }
0x123d   : > { %v1835_v10 = vpop.f32.mrb[48].mxu1 }
0x123e   : > { %v1836_v11 = vadd.f32 %v1835_v10, %v1785_v7  ;;  %v4007_v12 = vpop.f32.mrb[49].mxu1 }
0x123f   : > { %v1838_v8 = vpop.f32.mrb[50].mxu1 }
0x1240   : > { %v4008_v13 = vpop.f32.mrb[51].mxu1  ;;  %v1841_v14 = vadd.f32 %v1836_v11, %v1711_v55 }
0x1242   : > { %v1842_v15 = vsel %vm396_vm1, %v1841_v14, 0.0 }
0x1243   : > { %1843 = vadd.xlane.f32.xlu0 %v1842_v15 }
0x12d0   : > { %v1844_v16 = vpop.xlane.xlu0 %1843 }
0x12d1   : > { %v1845_v17 = vmul.f32 0.03125, %v1844_v16 }
0x12d3   : > { %v1846_v18 = vsub.f32 %v1841_v14, %v1845_v17 }
0x12d5   : > { %v1847_v19 = vmul.f32 %v1846_v18, %v1846_v18 }
0x12d7   : > { %v1848_v20 = vsel %vm396_vm1, %v1847_v19, 0.0 }
0x12d8   : > { %1849 = vadd.xlane.f32.xlu1 %v1848_v20 }
0x1365   : > { %v1850_v29 = vpop.xlane.xlu1 %1849 }
0x1366   : > { %v1851_v30 = vmul.f32 0.03125, %v1850_v29 }
0x1368   : > { %v1852_v31 = vadd.f32 1e-06, %v1851_v30  ;;  %v4277_v30 = vld [vmem:[%s5176_s3 + $0x110] sm:$0xff]  }
0x136a   : > { %4313 = vrsqrt.f32 %v1852_v31 }
0x1374   : > { %v4314_v35 = vpop.eup %4313 }
0x1375   : > { %v1854_v37 = vmul.f32 %v4314_v35, %v1846_v18 }
0x1377   : > { %v1859_v38 = vmul.f32 %v1858_v34, %v1854_v37  ;;  %v4278_v34 = vld [vmem:[%s5176_s3 + $0x118] sm:$0xff]  }
0x1379   : > { %v4878_v39 = vadd.f32 %v1863_v36, %v1859_v38 }
0x137b   : > { %v4882_v40 = vpack.c.bf16 %v4878_v39, %v4878_v39 }
0x137d   : > { %4022 = vmatmul.mubr.msk.bf16.vlgmr.msra.gmra.mrb[52].mxu1 %vm396_vm1, %v4882_v40  ;;  %4030 = vmatmul.mubr.msk.bf16.vlgmr.msra.gmra.mrb[56].mxu0 %vm396_vm1, %v4882_v40 }
0x137e   : > { %4035 = vmatprep.mubr.msk.bf16.mxu1 %vm4415_vm0, %v4414_v2  ;;  %4041 = vmatprep.mubr.msk.bf16.mxu0 %vm4415_vm0, %v4414_v2 }
0x1450   : > { %v1984_v44 = vpop.f32.mrb[52].mxu1  ;;  %v2036_v45 = vpop.f32.mrb[56].mxu0 }
0x1451   : > { %v2043_v46 = vpack.c.bf16 %v1984_v44, %v1984_v44  ;;  %v2102_v48 = vpack.c.bf16 %v2036_v45, %v2036_v45  ;;  %v4023_v50 = vpop.f32.mrb[53].mxu1  ;;  %v4031_v51 = vpop.f32.mrb[57].mxu0 }
0x1452   : > { %v1987_v52 = vpop.f32.mrb[54].mxu1  ;;  %v2039_v53 = vpop.f32.mrb[58].mxu0 }
0x1453   : > { %v2048_v54 = vsel %vm549_vm2, %v2043_v46, 0  ;;  %v2107_v55 = vsel %vm612_vm6, %v2102_v48, 0  ;;  %v4024_v56 = vpop.f32.mrb[55].mxu1  ;;  %v4032_v57 = vpop.f32.mrb[59].mxu0 }
0x1454   : > { %4034 = vmatpush3.bf16.xpose.msra.mxu1 %v2048_v54  ;;  %4040 = vmatpush3.bf16.msra.mxu0 %v2107_v55 }
0x1455   : > { %4045 = vmatprep.subr.bf16.mxu1 %v4414_v2  ;;  %4053 = vmatprep.subr.bf16.mxu0 %v4414_v2 }
0x145b   : > { %4036 = vmatmul.mubr.msk.bf16.vlgmr.msra.gmra.mrb[56].mxu1 %vm549_vm2, %v2042_v58 }
0x145c   : > { %4046 = vmatpush3.bf16.msra.mxu1 %v4273_v59  ;;  %4049 = vmatprep.mubr.msk.bf16.mxu1 %vm4415_vm0, %v4414_v2 }
0x145d   : > { %4047 = vmatprep.subr.bf16.mxu1 %v4414_v2 }
0x1460   : > { %4048 = vmatpush3.bf16.msra.mxu1 %v4274_v61  ;;  %v3621_v61 = vld [vmem:[%s5177_s4 + $0x14] sm:$0xf] }
0x1461   : > { %4061 = vmatprep.subr.bf16.mxu1 %v4414_v2 }
0x1463   : > { %4050 = vmatmul.mubr.msk.bf16.vlgmr.msra.gmra.mrb[60].mxu1 %vm396_vm1, %v4563_v9 }
0x1464   : > { %4062 = vmatpush3.bf16.msra.mxu1 %v4275_v62  ;;  %4065 = vmatprep.mubr.msk.bf16.mxu1 %vm4415_vm0, %v4414_v2  ;;  %v2437_v62 = vsel %vm612_vm6, %v3621_v61, 0 }
0x1465   : > { %4063 = vmatprep.subr.bf16.mxu1 %v4414_v2 }
0x1468   : > { %4064 = vmatpush3.bf16.msra.mxu1 %v4276_v63 }
0x1469   : > { %4075 = vmatprep.subr.bf16.mxu1 %v4414_v2 }
0x146b   : > { %4066 = vmatmul.mubr.msk.bf16.vlgmr.msra.gmra.mrb[64].mxu1 %vm396_vm1, %v4882_v40 }
0x146c   : > { %4077 = vmatprep.mubr.msk.bf16.mxu1 %vm4415_vm0, %v4414_v2 }
0x152e   : > { %v2084_v0 = vpop.f32.mrb[56].mxu1 }
0x152f   : > { %v2085_v1 = vadd.f32 %v2084_v0, %v4595_v28  ;;  %v4037_v3 = vpop.f32.mrb[57].mxu1 }
0x1530   : > { %v2087_v4 = vpop.f32.mrb[58].mxu1 }
0x1531   : > { %v4038_v7 = vpop.f32.mrb[59].mxu1  ;;  %v2090_v10 = vsel %vm549_vm2, %v2085_v1, -inf }
0x1532   : > { %2091 = vmax.xlane.f32.xlu0 %v2090_v10  ;;  %v4279_v10 = vld [vmem:[%s5176_s3 + $0x120] sm:$0xff]  }
0x1536   : > { %v2213_v11 = vpop.f32.mrb[60].mxu1 }
0x1537   : > { %v4051_v12 = vpop.f32.mrb[61].mxu1  ;;  %v2323_v46 = vpack.c.bf16 %v2213_v11, %v2213_v11 }
0x1538   : > { %v2216_v8 = vpop.f32.mrb[62].mxu1  ;;  %v4280_v12 = vld [vmem:[%s5176_s3 + $0x128] sm:$0xff]  }
0x1539   : > { %v4052_v13 = vpop.f32.mrb[63].mxu1 }
0x153a   : > { %v4281_v13 = vld [vmem:[%s5176_s3 + $0xe0] sm:$0xff]  }
0x153e   : > { %v2317_v14 = vpop.f32.mrb[64].mxu1 }
0x153f   : > { %v2383_v15 = vpack.c.bf16 %v2317_v14, %v2317_v14  ;;  %v4067_v16 = vpop.f32.mrb[65].mxu1 }
0x1540   : > { %v2320_v17 = vpop.f32.mrb[66].mxu1 }
0x1541   : > { %v2388_v18 = vsel %vm612_vm6, %v2383_v15, 0  ;;  %v4068_v19 = vpop.f32.mrb[67].mxu1 }
0x1542   : > { %4076 = vmatpush3.bf16.msra.mxu1 %v2388_v18  ;;  %v4282_v18 = vld [vmem:[%s5176_s3 + $0xe8] sm:$0xff]  }
0x1543   : > { %4087 = vmatprep.subr.bf16.mxu1 %v4414_v2 }
0x15bf   : > { %v2092_v20 = vpop.xlane.xlu0 %2091 }
0x15c0   : > { %v2093_v21 = vsub.f32 %v2085_v1, %v2092_v20  ;;  %v3597_v1 = vld [vmem:[%s5177_s4 + $0x10] sm:$0xf]  ;;  %v4283_v20 = vld [vmem:[%s5176_s3 + $0x160] sm:$0xff]  }
0x15c1   : > { %v2483_v7 = vsel %vm612_vm6, %v3597_v1, 0 }
0x15c2   : > { %v2094_v22 = vmul.f32 1.442695, %v2093_v21 }
0x15c4   : > { %4315 = vpow2.f32 %v2094_v22 }
0x15ce   : > { %v4316_v23 = vpop.eup %4315 }
0x15cf   : > { %v2096_v25 = vsel %vm549_vm2, %v4316_v23, 0.0 }
0x15d0   : > { %2097 = vadd.xlane.f32.xlu1 %v2096_v25  ;;  %v4284_v25 = vld [vmem:[%s5176_s3 + $0x168] sm:$0xff]  }
0x165d   : > { %v2098_v26 = vpop.xlane.xlu1 %2097 }
0x165e   : > { %4317 = vrcp.f32 %v2098_v26 }
0x1668   : > { %v4318_v27 = vpop.eup %4317 }
0x1669   : > { %v2100_v29 = vmul.f32 %v4318_v27, %v4316_v23 }
0x166b   : > { %v2101_v31 = vpack.c.bf16 %v2100_v29, %v2100_v29 }
0x166d   : > { %4042 = vmatmul.mubr.msk.bf16.vlgmr.msra.gmra.mrb[60].mxu0 %vm549_vm2, %v2101_v31 }
0x166e   : > { %4054 = vmatpush3.bf16.msra.mxu0 %v4277_v30  ;;  %4057 = vmatprep.mubr.msk.bf16.mxu0 %vm4415_vm0, %v4414_v2 }
0x166f   : > { %4055 = vmatprep.subr.bf16.mxu0 %v4414_v2 }
0x1672   : > { %4056 = vmatpush3.bf16.msra.mxu0 %v4278_v34 }
0x1673   : > { %4069 = vmatprep.subr.bf16.mxu0 %v4414_v2 }
0x1675   : > { %4058 = vmatmul.mubr.msk.bf16.vlgmr.msra.gmra.mrb[64].mxu0 %vm396_vm1, %v4882_v40 }
0x1676   : > { %4071 = vmatprep.mubr.msk.bf16.mxu0 %vm4415_vm0, %v4414_v2 }
0x1740   : > { %v2143_v35 = vpop.f32.mrb[60].mxu0 }
0x1741   : > { %v4043_v36 = vpop.f32.mrb[61].mxu0  ;;  %v2151_v11 = vpack.c.bf16 %v2143_v35, %v2143_v35 }
0x1742   : > { %v2146_v37 = vpop.f32.mrb[62].mxu0 }
0x1743   : > { %v4044_v38 = vpop.f32.mrb[63].mxu0 }
0x1748   : > { %v2265_v41 = vpop.f32.mrb[64].mxu0 }
0x1749   : > { %v2324_v42 = vpack.c.bf16 %v2265_v41, %v2265_v41  ;;  %v4059_v43 = vpop.f32.mrb[65].mxu0 }
0x174a   : > { %v2268_v6 = vpop.f32.mrb[66].mxu0 }
0x174b   : > { %v2329_v44 = vsel %vm549_vm2, %v2324_v42, 0  ;;  %v4060_v45 = vpop.f32.mrb[67].mxu0 }
0x174c   : > { %4070 = vmatpush3.bf16.xpose.msra.mxu0 %v2329_v44 }
0x174d   : > { %4081 = vmatprep.subr.bf16.mxu0 %v4414_v2 }
0x1753   : > { %4072 = vmatmul.mubr.msk.bf16.vlgmr.msra.gmra.mrb[68].mxu0 %vm549_vm2, %v2323_v46 }
0x1754   : > { %4083 = vmatprep.mubr.msk.bf16.mxu0 %vm4415_vm0, %v4414_v2  ;;  %4082 = vmatpush3.bf16.msra.mxu0 %v2437_v62 }
0x1755   : > { %4093 = vmatprep.subr.bf16.mxu0 %v4414_v2 }
0x1826   : > { %v2365_v48 = vpop.f32.mrb[68].mxu0 }
0x1827   : > { %v2366_v50 = vadd.f32 %v2365_v48, %v4595_v28  ;;  %v4073_v51 = vpop.f32.mrb[69].mxu0 }
0x1828   : > { %v2368_v52 = vpop.f32.mrb[70].mxu0 }
0x1829   : > { %v4074_v53 = vpop.f32.mrb[71].mxu0  ;;  %v2371_v54 = vsel %vm549_vm2, %v2366_v50, -inf }
0x182a   : > { %2372 = vmax.xlane.f32.xlu0 %v2371_v54 }
0x18b7   : > { %v2373_v55 = vpop.xlane.xlu0 %2372 }
0x18b8   : > { %v2374_v56 = vsub.f32 %v2366_v50, %v2373_v55 }
0x18ba   : > { %v2375_v57 = vmul.f32 1.442695, %v2374_v56 }
0x18bc   : > { %4319 = vpow2.f32 %v2375_v57 }
0x18c6   : > { %v4320_v58 = vpop.eup %4319 }
0x18c7   : > { %v2377_v59 = vsel %vm549_vm2, %v4320_v58, 0.0 }
0x18c8   : > { %2378 = vadd.xlane.f32.xlu1 %v2377_v59 }
0x1955   : > { %v2379_v63 = vpop.xlane.xlu1 %2378 }
0x1956   : > { %4321 = vrcp.f32 %v2379_v63 }
0x1960   : > { %v4322_v0 = vpop.eup %4321 }
0x1961   : > { %v2381_v3 = vmul.f32 %v4322_v0, %v4320_v58 }
0x1963   : > { %v2382_v4 = vpack.c.bf16 %v2381_v3, %v2381_v3  ;;  %v3647_v3 = vld [vmem:[%s5177_s4 + $0x18] sm:$0xf] }
0x1965   : > { %4078 = vmatmul.mubr.msk.bf16.vlgmr.msra.gmra.mrb[68].mxu1 %vm549_vm2, %v2382_v4  ;;  %v2810_v4 = vsel %vm612_vm6, %v3647_v3, 0 }
0x1966   : > { %4088 = vmatpush3.bf16.msra.mxu1 %v2483_v7  ;;  %4089 = vmatprep.mubr.msk.bf16.mxu1 %vm4415_vm0, %v4414_v2 }
0x1967   : > { %4101 = vmatprep.subr.bf16.mxu1 %v4414_v2 }
0x196d   : > { %4090 = vmatmul.mubr.msk.bf16.vlgmr.msra.gmra.mrb[72].mxu1 %vm549_vm2, %v2151_v11 }
0x196e   : > { %4102 = vmatpush3.bf16.msra.mxu1 %v4279_v10  ;;  %4105 = vmatprep.mubr.msk.bf16.mxu1 %vm4415_vm0, %v4414_v2 }
0x196f   : > { %4103 = vmatprep.subr.bf16.mxu1 %v4414_v2 }
0x1972   : > { %4104 = vmatpush3.bf16.msra.mxu1 %v4280_v12  ;;  %v4285_v12 = vld [vmem:[%s5176_s3 + $0xf0] sm:$0xff]  }
0x1973   : > { %4117 = vmatprep.subr.bf16.mxu1 %v4414_v2 }
0x1975   : > { %4106 = vmatmul.mubr.msk.bf16.vlgmr.msra.gmra.mrb[76].mxu1 %vm396_vm1, %v4882_v40 }
0x1976   : > { %4119 = vmatprep.mubr.msk.bf16.mxu1 %vm4415_vm0, %v4414_v2 }
0x1a38   : > { %v2424_v8 = vpop.f32.mrb[68].mxu1 }
0x1a39   : > { %v2432_v14 = vpack.c.bf16 %v2424_v8, %v2424_v8  ;;  %v4079_v15 = vpop.f32.mrb[69].mxu1 }
0x1a3a   : > { %v2427_v16 = vpop.f32.mrb[70].mxu1  ;;  %v4288_v15 = vld [vmem:[%s5176_s3 + $0x178] sm:$0xff]  }
0x1a3b   : > { %v4080_v17 = vpop.f32.mrb[71].mxu1  ;;  %4084 = vmatmul.mubr.msk.bf16.vlgmr.msra.gmra.mrb[72].mxu0 %vm549_vm2, %v2432_v14  ;;  %v4287_v14 = vld [vmem:[%s5176_s3 + $0x170] sm:$0xff]  }
0x1a3c   : > { %4094 = vmatpush3.bf16.msra.mxu0 %v4281_v13  ;;  %4097 = vmatprep.mubr.msk.bf16.mxu0 %vm4415_vm0, %v4414_v2  ;;  %v4286_v13 = vld [vmem:[%s5176_s3 + $0xf8] sm:$0xff]   ;;  %v4289_v16 = vld [vmem:[%s5176_s3 + $0x130] sm:$0xff]  }
0x1a3d   : > { %4095 = vmatprep.subr.bf16.mxu0 %v4414_v2 }
0x1a40   : > { %v2519_v19 = vpop.f32.mrb[72].mxu1  ;;  %4096 = vmatpush3.bf16.msra.mxu0 %v4282_v18 }
0x1a41   : > { %v4091_v21 = vpop.f32.mrb[73].mxu1  ;;  %4109 = vmatprep.subr.bf16.mxu0 %v4414_v2 }
0x1a42   : > { %v2522_v22 = vpop.f32.mrb[74].mxu1  ;;  %v4290_v21 = vld [vmem:[%s5176_s3 + $0x138] sm:$0xff]  }
0x1a43   : > { %v4092_v23 = vpop.f32.mrb[75].mxu1  ;;  %4098 = vmatmul.mubr.msk.bf16.vlgmr.msra.gmra.mrb[76].mxu0 %vm396_vm1, %v4563_v9 }
0x1a44   : > { %4110 = vmatpush3.bf16.msra.mxu0 %v4283_v20  ;;  %4113 = vmatprep.mubr.msk.bf16.mxu0 %vm4415_vm0, %v4414_v2 }
0x1a45   : > { %4111 = vmatprep.subr.bf16.mxu0 %v4414_v2 }
0x1a48   : > { %v2638_v26 = vpop.f32.mrb[76].mxu1  ;;  %4112 = vmatpush3.bf16.msra.mxu0 %v4284_v25 }
0x1a49   : > { %v2697_v27 = vpack.c.bf16 %v2638_v26, %v2638_v26  ;;  %v4107_v29 = vpop.f32.mrb[77].mxu1  ;;  %4123 = vmatprep.subr.bf16.mxu0 %v4414_v2 }
0x1a4a   : > { %v2641_v30 = vpop.f32.mrb[78].mxu1 }
0x1a4b   : > { %v2702_v31 = vsel %vm549_vm2, %v2697_v27, 0  ;;  %v4108_v34 = vpop.f32.mrb[79].mxu1  ;;  %4114 = vmatmul.mubr.msk.bf16.vlgmr.msra.gmra.mrb[80].mxu0 %vm396_vm1, %v4882_v40 }
0x1a4c   : > { %4118 = vmatpush3.bf16.xpose.msra.mxu1 %v2702_v31  ;;  %4125 = vmatprep.mubr.msk.bf16.mxu0 %vm4415_vm0, %v4414_v2 }
0x1a4d   : > { %4129 = vmatprep.subr.bf16.mxu1 %v4414_v2 }
0x1b0e   : > { %v2473_v35 = vpop.f32.mrb[72].mxu0 }
0x1b0f   : > { %v5008_v36 = vadd.f32 %v2519_v19, %v2473_v35  ;;  %v4085_v37 = vpop.f32.mrb[73].mxu0 }
0x1b10   : > { %v2476_v38 = vpop.f32.mrb[74].mxu0 }
0x1b11   : > { %v4086_v41 = vpop.f32.mrb[75].mxu0 }
0x1b16   : > { %v2586_v42 = vpop.f32.mrb[76].mxu0 }
0x1b17   : > { %v2696_v43 = vpack.c.bf16 %v2586_v42, %v2586_v42  ;;  %v4099_v6 = vpop.f32.mrb[77].mxu0 }
0x1b18   : > { %v2589_v44 = vpop.f32.mrb[78].mxu0 }
0x1b19   : > { %v4100_v45 = vpop.f32.mrb[79].mxu0  ;;  %4120 = vmatmul.mubr.msk.bf16.vlgmr.msra.gmra.mrb[80].mxu1 %vm549_vm2, %v2696_v43 }
0x1b1a   : > { %4131 = vmatprep.mubr.msk.bf16.mxu1 %vm4415_vm0, %v4414_v2  ;;  %4130 = vmatpush3.bf16.msra.mxu1 %v2810_v4 }
0x1b1b   : > { %4143 = vmatprep.subr.bf16.mxu1 %v4414_v2 }
0x1b1e   : > { %v2690_v46 = vpop.f32.mrb[80].mxu0 }
0x1b1f   : > { %v2756_v48 = vpack.c.bf16 %v2690_v46, %v2690_v46  ;;  %v4115_v50 = vpop.f32.mrb[81].mxu0 }
0x1b20   : > { %v2693_v51 = vpop.f32.mrb[82].mxu0 }
0x1b21   : > { %v2761_v52 = vsel %vm612_vm6, %v2756_v48, 0  ;;  %v4116_v53 = vpop.f32.mrb[83].mxu0 }
0x1b22   : > { %4124 = vmatpush3.bf16.msra.mxu0 %v2761_v52 }
0x1b23   : > { %4135 = vmatprep.subr.bf16.mxu0 %v4414_v2 }
0x1bec   : > { %v2738_v54 = vpop.f32.mrb[80].mxu1 }
0x1bed   : > { %v2739_v55 = vadd.f32 %v2738_v54, %v4595_v28  ;;  %v4121_v56 = vpop.f32.mrb[81].mxu1 }
0x1bee   : > { %v2741_v57 = vpop.f32.mrb[82].mxu1 }
0x1bef   : > { %v4122_v58 = vpop.f32.mrb[83].mxu1  ;;  %v2744_v59 = vsel %vm549_vm2, %v2739_v55, -inf }
0x1bf0   : > { %2745 = vmax.xlane.f32.xlu0 %v2744_v59 }
0x1c7d   : > { %v2746_v61 = vpop.xlane.xlu0 %2745 }
0x1c7e   : > { %v2747_v62 = vsub.f32 %v2739_v55, %v2746_v61 }
0x1c80   : > { %v2748_v63 = vmul.f32 1.442695, %v2747_v62  ;;  %v3672_v62 = vld [vmem:[%s5177_s4 + $0x1c] sm:$0xf] }
0x1c82   : > { %4323 = vpow2.f32 %v2748_v63 }
0x1c8c   : > { %v4324_v0 = vpop.eup %4323 }
0x1c8d   : > { %v2750_v1 = vsel %vm549_vm2, %v4324_v0, 0.0 }
0x1c8e   : > { %2751 = vadd.xlane.f32.xlu1 %v2750_v1 }
0x1d1b   : > { %v2752_v7 = vpop.xlane.xlu1 %2751 }
0x1d1c   : > { %4325 = vrcp.f32 %v2752_v7 }
0x1d26   : > { %v4326_v10 = vpop.eup %4325 }
0x1d27   : > { %v2754_v11 = vmul.f32 %v4326_v10, %v4324_v0 }
0x1d29   : > { %v2755_v8 = vpack.c.bf16 %v2754_v11, %v2754_v11 }
0x1d2b   : > { %4126 = vmatmul.mubr.msk.bf16.vlgmr.msra.gmra.mrb[84].mxu0 %vm549_vm2, %v2755_v8 }
0x1d2c   : > { %4136 = vmatpush3.bf16.msra.mxu0 %v4285_v12  ;;  %4139 = vmatprep.mubr.msk.bf16.mxu0 %vm4415_vm0, %v4414_v2 }
0x1d2d   : > { %4137 = vmatprep.subr.bf16.mxu0 %v4414_v2 }
0x1d30   : > { %4138 = vmatpush3.bf16.msra.mxu0 %v4286_v13 }
0x1d31   : > { %4151 = vmatprep.subr.bf16.mxu0 %v4414_v2 }
0x1d33   : > { %4140 = vmatmul.mubr.msk.bf16.vlgmr.msra.gmra.mrb[88].mxu0 %vm396_vm1, %v4563_v9 }
0x1d34   : > { %4152 = vmatpush3.bf16.msra.mxu0 %v4287_v14  ;;  %4155 = vmatprep.mubr.msk.bf16.mxu0 %vm4415_vm0, %v4414_v2 }
0x1d35   : > { %4153 = vmatprep.subr.bf16.mxu0 %v4414_v2 }
0x1d38   : > { %4154 = vmatpush3.bf16.msra.mxu0 %v4288_v15 }
0x1d39   : > { %4165 = vmatprep.subr.bf16.mxu0 %v4414_v2 }
0x1d3b   : > { %4156 = vmatmul.mubr.msk.bf16.vlgmr.msra.gmra.mrb[92].mxu0 %vm396_vm1, %v4882_v40 }
0x1d3c   : > { %4167 = vmatprep.mubr.msk.bf16.mxu0 %vm4415_vm0, %v4414_v2 }
0x1dfe   : > { %v2797_v9 = vpop.f32.mrb[84].mxu0 }
0x1dff   : > { %v2805_v17 = vpack.c.bf16 %v2797_v9, %v2797_v9  ;;  %v4127_v18 = vpop.f32.mrb[85].mxu0 }
0x1e00   : > { %v2800_v19 = vpop.f32.mrb[86].mxu0 }
0x1e01   : > { %v4128_v20 = vpop.f32.mrb[87].mxu0  ;;  %4132 = vmatmul.mubr.msk.bf16.vlgmr.msra.gmra.mrb[84].mxu1 %vm549_vm2, %v2805_v17 }
0x1e02   : > { %4144 = vmatpush3.bf16.msra.mxu1 %v4289_v16  ;;  %4147 = vmatprep.mubr.msk.bf16.mxu1 %vm4415_vm0, %v4414_v2 }
0x1e03   : > { %4145 = vmatprep.subr.bf16.mxu1 %v4414_v2 }
0x1e06   : > { %4146 = vmatpush3.bf16.msra.mxu1 %v4290_v21  ;;  %v2914_v22 = vpop.f32.mrb[88].mxu0 }
0x1e07   : > { %v4141_v23 = vpop.f32.mrb[89].mxu0  ;;  %4159 = vmatprep.subr.bf16.mxu1 %v4414_v2  ;;  %v3024_v50 = vpack.c.bf16 %v2914_v22, %v2914_v22 }
0x1e08   : > { %v2917_v25 = vpop.f32.mrb[90].mxu0  ;;  %v4291_v23 = vld [vmem:[%s5178_s5 + $0x10] sm:$0xff]  }
0x1e09   : > { %4148 = vmatmul.mubr.msk.bf16.vlgmr.msra.gmra.mrb[88].mxu1 %vm396_vm1, %v4882_v40  ;;  %v4142_v26 = vpop.f32.mrb[91].mxu0 }
0x1e0a   : > { %4161 = vmatprep.mubr.msk.bf16.mxu1 %vm4415_vm0, %v4414_v2 }
0x1e0e   : > { %v3018_v27 = vpop.f32.mrb[92].mxu0 }
0x1e0f   : > { %v3084_v29 = vpack.c.bf16 %v3018_v27, %v3018_v27  ;;  %v4157_v30 = vpop.f32.mrb[93].mxu0 }
0x1e10   : > { %v3021_v31 = vpop.f32.mrb[94].mxu0 }
0x1e11   : > { %v3089_v34 = vsel %vm612_vm6, %v3084_v29, 0  ;;  %v4158_v35 = vpop.f32.mrb[95].mxu0  ;;  %v3573_v29 = vld [vmem:[%s5180_s7 + $0x8] sm:$0x3f] }
0x1e12   : > { %4166 = vmatpush3.bf16.msra.mxu0 %v3089_v34  ;;  %v3198_v30 = vrot.slane %v3573_v29, %v1704_v47  ;;  %v3203_v35 = vrot.slane %v3573_v29, %v1709_v49  ;;  %v4294_v47 = vld [vmem:[%s5179_s6 + $0x18] sm:$0xff]   ;;  %v3214_v49 = vrot.slane %v3573_v29, %v1719_v60 }
0x1e13   : > { %4177 = vmatprep.subr.bf16.mxu0 %v4414_v2 }
0x1ed4   : > { %v2846_v37 = vpop.f32.mrb[84].mxu1 }
0x1ed5   : > { %v2852_v38 = vadd.f32 %v2846_v37, %v5008_v36  ;;  %v4133_v41 = vpop.f32.mrb[85].mxu1 }
0x1ed6   : > { %v2849_v42 = vpop.f32.mrb[86].mxu1 }
0x1ed7   : > { %v4134_v40 = vpop.f32.mrb[87].mxu1  ;;  %v4293_v42 = vld [vmem:[%s5179_s6 + $0x10] sm:$0xff]  }
0x1edc   : > { %v2966_v43 = vpop.f32.mrb[88].mxu1 }
0x1edd   : > { %v3025_v6 = vpack.c.bf16 %v2966_v43, %v2966_v43  ;;  %v4149_v44 = vpop.f32.mrb[89].mxu1 }
0x1ede   : > { %v2969_v45 = vpop.f32.mrb[90].mxu1 }
0x1edf   : > { %v3030_v46 = vsel %vm549_vm2, %v3025_v6, 0  ;;  %v4150_v48 = vpop.f32.mrb[91].mxu1 }
0x1ee0   : > { %4160 = vmatpush3.bf16.xpose.msra.mxu1 %v3030_v46 }
0x1ee1   : > { %4171 = vmatprep.subr.bf16.mxu1 %v4414_v2 }
0x1ee7   : > { %4162 = vmatmul.mubr.msk.bf16.vlgmr.msra.gmra.mrb[92].mxu1 %vm549_vm2, %v3024_v50 }
0x1ee8   : > { %4173 = vmatprep.mubr.msk.bf16.mxu1 %vm4415_vm0, %v4414_v2 }
0x1fba   : > { %v3066_v36 = vpop.f32.mrb[92].mxu1 }
0x1fbb   : > { %v3067_v51 = vadd.f32 %v3066_v36, %v4595_v28  ;;  %v4163_v52 = vpop.f32.mrb[93].mxu1  ;;  %v3138_v28 = vsel %vm612_vm6, %v3672_v62, 0 }
0x1fbc   : > { %v3069_v53 = vpop.f32.mrb[94].mxu1  ;;  %4172 = vmatpush3.bf16.msra.mxu1 %v3138_v28 }
0x1fbd   : > { %v4164_v54 = vpop.f32.mrb[95].mxu1  ;;  %v3072_v55 = vsel %vm549_vm2, %v3067_v51, -inf  ;;  %4185 = vmatprep.subr.bf16.mxu1 %v4414_v2 }
0x1fbe   : > { %3073 = vmax.xlane.f32.xlu0 %v3072_v55 }
0x204b   : > { %v3074_v56 = vpop.xlane.xlu0 %3073 }
0x204c   : > { %v3075_v57 = vsub.f32 %v3067_v51, %v3074_v56 }
0x204e   : > { %v3076_v58 = vmul.f32 1.442695, %v3075_v57 }
0x2050   : > { %4327 = vpow2.f32 %v3076_v58 }
0x205a   : > { %v4328_v59 = vpop.eup %4327 }
0x205b   : > { %v3078_v61 = vsel %vm549_vm2, %v4328_v59, 0.0 }
0x205c   : > { %3079 = vadd.xlane.f32.xlu1 %v3078_v61 }
0x20e9   : > { %v3080_v63 = vpop.xlane.xlu1 %3079 }
0x20ea   : > { %4329 = vrcp.f32 %v3080_v63 }
0x20f4   : > { %v4330_v0 = vpop.eup %4329 }
0x20f5   : > { %v3082_v1 = vmul.f32 %v4330_v0, %v4328_v59 }
0x20f7   : > { %v3083_v3 = vpack.c.bf16 %v3082_v1, %v3082_v1  ;;  %v3358_v1 = vrot.slane %v3573_v29, %v1862_v33 }
0x20f9   : > { %4168 = vmatmul.mubr.msk.bf16.vlgmr.msra.gmra.mrb[96].mxu0 %vm549_vm2, %v3083_v3 }
0x20fa   : > { %4181 = vmatprep.mubr.msk.bf16.mxu0 %vm4415_vm0, %v4414_v2  ;;  %4178 = vmatpush3.bf16.msra.mxu0 %v4291_v23 }
0x20fb   : > { %4179 = vmatprep.subr.bf16.mxu0 %v4414_v2 }
0x21cc   : > { %v3125_v4 = vpop.f32.mrb[96].mxu0 }
0x21cd   : > { %v3133_v7 = vpack.c.bf16 %v3125_v4, %v3125_v4  ;;  %v4169_v10 = vpop.f32.mrb[97].mxu0  ;;  %v3688_v4 = vld [vmem:[%s5181_s8] ss:$0 sm:$0xff] }
0x21ce   : > { %v3128_v11 = vpop.f32.mrb[98].mxu0 }
0x21cf   : > { %v4170_v12 = vpop.f32.mrb[99].mxu0  ;;  %4174 = vmatmul.mubr.msk.bf16.vlgmr.msra.gmra.mrb[96].mxu1 %vm549_vm2, %v3133_v7 }
0x21d0   : > { %4189 = vmatprep.mubr.msk.bf16.mxu1 %vm4415_vm0, %v4414_v2  ;;  %4186 = vmatpush3.bf16.msra.mxu1 %v4293_v42  ;;  %v4417_v12 = vmov 0  }
0x21d1   : > { %4187 = vmatprep.subr.bf16.mxu1 %v4414_v2  ;;  %v3280_v2 = vrot.slane %v3573_v29, %v1784_v5  ;;  %v3353_v5 = vrot.slane %v3573_v29, %v1857_v32  ;;  %4237 = vset.pattern.permute.xlu1 %v4417_v12  ;;  %v3689_v32 = vld [vmem:[#allocation4] ss:$0 sm:$0xff] }
0x21d2   : > { %4238 = vset.pattern.permute.xlu0 %v4417_v12 }
0x21d4   : > { %4188 = vmatpush3.bf16.msra.mxu1 %v4294_v47 }
0x22a2   : > { %v3174_v8 = vpop.f32.mrb[96].mxu1 }
0x22a3   : > { %v3180_v13 = vadd.f32 %v3174_v8, %v2852_v38  ;;  %v4175_v14 = vpop.f32.mrb[97].mxu1 }
0x22a4   : > { %v3177_v15 = vpop.f32.mrb[98].mxu1 }
0x22a5   : > { %v4176_v9 = vpop.f32.mrb[99].mxu1  ;;  %v3181_v16 = vadd.f32 %v3180_v13, %v4878_v39  ;;  %v4292_v39 = vld [vmem:[%s5178_s5 + $0x18] sm:$0xff]  }
0x22a6   : > { %4180 = vmatpush3.bf16.msra.mxu0 %v4292_v39 }
0x22a7   : > { %v3182_v17 = vsel %vm396_vm1, %v3181_v16, 0.0 }
0x22a8   : > { %3183 = vadd.xlane.f32.xlu0 %v3182_v17 }
0x2335   : > { %v3184_v18 = vpop.xlane.xlu0 %3183 }
0x2336   : > { %v3185_v19 = vmul.f32 0.03125, %v3184_v18 }
0x2338   : > { %v3186_v20 = vsub.f32 %v3181_v16, %v3185_v19 }
0x233a   : > { %v3187_v21 = vmul.f32 %v3186_v20, %v3186_v20 }
0x233c   : > { %v3188_v22 = vsel %vm396_vm1, %v3187_v21, 0.0 }
0x233d   : > { %3189 = vadd.xlane.f32.xlu1 %v3188_v22 }
0x23ca   : > { %v3190_v25 = vpop.xlane.xlu1 %3189 }
0x23cb   : > { %v3191_v26 = vmul.f32 0.03125, %v3190_v25 }
0x23cd   : > { %v3192_v27 = vadd.f32 1e-06, %v3191_v26 }
0x23cf   : > { %4331 = vrsqrt.f32 %v3192_v27 }
0x23d9   : > { %v4332_v31 = vpop.eup %4331 }
0x23da   : > { %v3194_v34 = vmul.f32 %v4332_v31, %v3186_v20 }
0x23dc   : > { %v3199_v37 = vmul.f32 %v3198_v30, %v3194_v34 }
0x23de   : > { %v3204_v38 = vadd.f32 %v3203_v35, %v3199_v37 }
0x23e0   : > { %v3205_v41 = vpack.c.bf16 %v3204_v38, %v3204_v38 }
0x23e2   : > { %4182 = vmatmul.mubr.msk.bf16.vlgmr.msra.gmra.mrb[100].mxu0 %vm396_vm1, %v3205_v41 }
0x24b5   : > { %v3264_v40 = vpop.f32.mrb[100].mxu0 }
0x24b6   : > { %v3265_v43 = vadd.f32 %v3264_v40, %v3214_v49  ;;  %v4183_v6 = vpop.f32.mrb[101].mxu0 }
0x24b7   : > { %v3267_v44 = vpop.f32.mrb[102].mxu0 }
0x24b8   : > { %v3270_v45 = vmax.f32 %v3265_v43, 0.0  ;;  %v4184_v46 = vpop.f32.mrb[103].mxu0 }
0x24ba   : > { %v3271_v48 = vpack.c.bf16 %v3270_v45, %v3270_v45 }
0x24bc   : > { %4190 = vmatmul.mubr.msk.bf16.vlgmr.msra.gmra.mrb[100].mxu1 %vm396_vm1, %v3271_v48 }
0x258f   : > { %v3330_v50 = vpop.f32.mrb[100].mxu1 }
0x2590   : > { %v3331_v36 = vadd.f32 %v3330_v50, %v3280_v2  ;;  %v4191_v51 = vpop.f32.mrb[101].mxu1 }
0x2591   : > { %v3333_v52 = vpop.f32.mrb[102].mxu1 }
0x2592   : > { %v4192_v53 = vpop.f32.mrb[103].mxu1  ;;  %v3336_v54 = vadd.f32 %v3331_v36, %v3204_v38 }
0x2594   : > { %v3337_v60 = vsel %vm396_vm1, %v3336_v54, 0.0 }
0x2595   : > { %3338 = vadd.xlane.f32.xlu0 %v3337_v60 }
0x2622   : > { %v3339_v55 = vpop.xlane.xlu0 %3338 }
0x2623   : > { %v3340_v56 = vmul.f32 0.03125, %v3339_v55 }
0x2625   : > { %v3341_v57 = vsub.f32 %v3336_v54, %v3340_v56 }
0x2627   : > { %v3342_v58 = vmul.f32 %v3341_v57, %v3341_v57 }
0x2629   : > { %v3343_v59 = vsel %vm396_vm1, %v3342_v58, 0.0 }
0x262a   : > { %3344 = vadd.xlane.f32.xlu1 %v3343_v59 }
0x26b7   : > { %v3345_v61 = vpop.xlane.xlu1 %3344 }
0x26b8   : > { %v3346_v62 = vmul.f32 0.03125, %v3345_v61 }
0x26ba   : > { %v3347_v28 = vadd.f32 1e-06, %v3346_v62 }
0x26bc   : > { %4333 = vrsqrt.f32 %v3347_v28 }
0x26c6   : > { %v4334_v63 = vpop.eup %4333 }
0x26c7   : > { %v3349_v0 = vmul.f32 %v4334_v63, %v3341_v57 }
0x26c9   : > { %v3354_v3 = vmul.f32 %v3353_v5, %v3349_v0 }
0x26cb   : > { %v3359_v7 = vadd.f32 %v3358_v1, %v3354_v3 }
0x26cd   : > { %v3367_v10 = vmul.f32 %v3688_v4, %v3359_v7 }
0x26cf   : > { %v3369_v11 = vsel %vm3368_vm7, %v3367_v10, 0.0 }
0x26d0   : > { %3370 = vadd.xlane.f32.xlu0 %v3369_v11 }
0x275d   : > { %v3371_v8 = vpop.xlane.xlu0 %3370 }
0x275e   : > { %v3379_v24 = vadd.f32 %v3689_v32, %v3371_v8 }
0x2760   : > { %3382 = vperm.xlu1 %4237, %v3379_v24  }
0x27df   : > { %v3383_v33 = vpop.permute.xlu1 %3382 }
0x27e0   : > { %3385 = vst [vmem:[%s344_s12 - $0x7] sm:$0x80] %v3383_v33 }
0x27e1   : > { %4360 = shalt.err (!%p4357_p8)
}
0x27e2   : > { %s4361_s26 = scalar_lea.hbm %s5133_s17, 16  ;;  %s4365_s12 = scalar_lea.hbm %s5182_s10, 32 }
0x27e3   : > { %p4362_p9 = scmp.ne.s32.totalorder %s5133_s17, %s4361_s26  ;;  %p4366_p0 = scmp.lt.u32.totalorder %s5133_s17, %s5182_s10 }
0x27e4   : > { %p4367_p1 = scmp.lt.u32.totalorder %s4365_s12, %s4361_s26  ;;  %p4369_p3 = scmp.lt.u32.totalorder %s4361_s26, %s5133_s17 }
0x27e5   : > { %p4363_p12 = pnand %p4362_p9, %p4518_p10 }
0x27e6   : > { %p4368_p2 = por %p4367_p1, %p4366_p0 }
0x27e7   : > { %p4364_p13 = pneg %p4363_p12 }
0x27e8   : > { %p4370_p4 = por %p4369_p3, %p4368_p2 }
0x27ea   : > { %p4371_p5 = pnand %p4370_p4, %p4364_p13 }
0x27ec   : > { %4374 = shalt.err (!%p4371_p5)
}
0x27ed   : > { %4193 = dma.vmem_to_hbm [thread:$0]  (%p4518_p10), %s5128_s13, 16, %s5133_s17, %s3387_s18  }
0x27ee PF: > { %p4199_p6 = scmp.ge.s32.totalorder %s4411_s21, 2  ;;  %s3411_s16 = sand.u32 1, %s4399_s0  }
0x27ef   : > { %s3412_s19 = scalar_lea.sflag [#allocation6], %s3411_s16 }
0x27f0   : > { %p4196_p7 = pnand %p4199_p6, %p4522_p11 }
0x27f2   : > { %4394 = dma.done.wait (!%p4196_p7), %s3412_s19, 16  }
0x27f3   : > { %4396 = vsyncadd (!%p4196_p7), %s3412_s19, 4294967280  ;;  %p28_p8 = scmp.ge.s32.totalorder %s4505_s24, 4   ;;  %s5186_s0 = smov %s4403_s20 }
0x27f4   : > { %s5187_s20 = smov %s4407_s9  ;;  %s5188_s9 = smov %s4516_s27 }
0x27f5   : > { %s5189_s21 = smov %s4505_s24  ;;  %30 = sbr.rel (!%p28_p8) target bundleno = 18 (0x12), region = 127 }
0x27fc   :  { %3416 = vsyncpa [#allocation6], 1 }
0x27fd   :  { %3418 = vsyncpa [#allocation6 + $0x1], 1 }

</bundles_post_ra>
